<compile_context>
chip_gen: v5e
topology: v5e:2x2
jax: 0.10.0
libtpu: 0.0.40
codegen_flags: <defaults>
</compile_context>

<pallas_src>
import jax
import jax.numpy as jnp
from jax.experimental import pallas as pl
from jax.experimental.pallas import tpu as pltpu


def _make_resblock_kernel(H, W, Bt, Cin, Cout, K, pad):
    HW = H * W
    L = Bt * HW
    # Tap offsets in row-major (kh, kw) order -- must match the per-tap weight
    # and mask layout built in the wrapper.
    taps = [(kh - pad, kw - pad) for kh in range(K) for kw in range(K)]

    def kernel(x_ref, m_ref, w1_ref, w2_ref, wc_ref, b1_ref, b2_ref, bc_ref,
               out_ref):
        x = x_ref[0]                                    # (Cin, L), lane-dense

        # Hoist all small parameter / mask loads out of the unrolled tap loops.
        masks_b = m_ref[...] > 0.5                      # (K*K, 1, L) bool
        w1 = w1_ref[...]                                # (K*K, Cin, Cin)
        w2 = w2_ref[...]                                # (K*K, Cout, Cin)
        wc = wc_ref[...]                                # (Cout, Cin)
        b1 = b1_ref[...]                                # (Cin, 1)
        b2 = b2_ref[...]                                # (Cout, 1)
        bc = bc_ref[...]                                # (Cout, 1)

        def conv(act, w, bias):
            # sum over K*K taps of  w_tap @ (lane-rolled, border-masked act);
            # bias is folded into the first tap's add (no zeros init).
            acc = None
            for t, (dh, dw) in enumerate(taps):
                d = dh * W + dw
                if d == 0:
                    col = act                           # center tap: mask is all-ones
                else:
                    # shifted[p] = act[p + d]; wraparound (incl. cross-image
                    # when Bt > 1) is killed by the border mask.
                    col = pltpu.roll(act, shift=(-d) % L, axis=1)
                    col = jnp.where(masks_b[t], col, 0.0)
                contrib = jnp.dot(w[t], col, preferred_element_type=jnp.float32)
                acc = (contrib + bias) if acc is None else (acc + contrib)
            return acc                                  # (n_out, L)

        h0 = jnp.maximum(x, 0.0)                        # relu(x)
        h1 = jnp.maximum(conv(h0, w1, b1), 0.0)         # relu(conv1)
        o2 = conv(h1, w2, b2)                           # conv2
        # residual: 1x1 channel_conv on the ORIGINAL (un-relu'd) x
        res = jnp.dot(wc, x, preferred_element_type=jnp.float32) + bc
        out_ref[0] = o2 + res                           # (Cout, L) lane-dense store

    return kernel


def _border_masks(H, W, K, pad, Bt):
    """Per-tap {0,1} masks implementing the conv's zero padding, tiled per image."""
    taps = [(kh - pad, kw - pad) for kh in range(K) for kw in range(K)]
    rr = jnp.arange(H)[:, None]
    cc = jnp.arange(W)[None, :]
    ms = []
    for dh, dw in taps:
        valid = ((rr + dh >= 0) & (rr + dh < H) &
                 (cc + dw >= 0) & (cc + dw < W))
        m = valid.astype(jnp.float32).reshape(1, H * W)
        ms.append(jnp.tile(m, (1, Bt)))                 # (1, Bt*H*W)
    return jnp.stack(ms, axis=0)                        # (K*K, 1, Bt*H*W)


def res_block_2d(x_nchw, params, kernel_size, padding, *, grid_steps=None):
    """Forward pass of ResBlock2d. x_nchw: (B, Cin, H, W) float32."""
    B, Cin, H, W = x_nchw.shape
    K, pad = kernel_size, padding
    assert H + 2 * pad - K + 1 == H, "residual add requires 'same' conv"
    HW = H * W

    # Grid-step choice: keep >= 2 "parallel" steps when B is even (v7x has two
    # TensorCores); the rest of the batch is packed onto lanes to amortize
    # per-step overhead (single-TC v5e/v6e can pass grid_steps=1).
    if grid_steps is None:
        grid_steps = 2 if (B >= 2 and B % 2 == 0) else 1
    G = grid_steps
    assert B % G == 0, "batch must divide evenly into grid steps"
    Bt = B // G
    L = Bt * HW

    w1, b1, w2, b2, wc, bc = (params["w1"], params["b1"], params["w2"],
                              params["b2"], params["wc"], params["bc"])
    Cout = w2.shape[0]

    # (B, Cin, H, W) -> (G, Cin, Bt*HW): Bt images per step packed onto lanes.
    x_flat = (x_nchw.reshape(G, Bt, Cin, HW)
              .transpose(0, 2, 1, 3)
              .reshape(G, Cin, L))

    # PyTorch conv weight (O, I, Kh, Kw) -> per-tap (K*K, O, I) matrices.
    w1_k = jnp.transpose(w1, (2, 3, 0, 1)).reshape(K * K, Cin, Cin)
    w2_k = jnp.transpose(w2, (2, 3, 0, 1)).reshape(K * K, Cout, Cin)
    wc_k = wc[:, :, 0, 0]                               # (Cout, Cin)
    b1_k = b1.reshape(Cin, 1)
    b2_k = b2.reshape(Cout, 1)
    bc_k = bc.reshape(Cout, 1)
    masks = _border_masks(H, W, K, pad, Bt)             # (K*K, 1, L)

    kernel = _make_resblock_kernel(H, W, Bt, Cin, Cout, K, pad)

    out_flat = pl.pallas_call(
        kernel,
        out_shape=jax.ShapeDtypeStruct((G, Cout, L), jnp.float32),
        grid_spec=pltpu.PrefetchScalarGridSpec(
            num_scalar_prefetch=0,
            grid=(G,),
            in_specs=[
                pl.BlockSpec((1, Cin, L), lambda b: (b, 0, 0)),
                pl.BlockSpec((K * K, 1, L), lambda b: (0, 0, 0)),
                pl.BlockSpec((K * K, Cin, Cin), lambda b: (0, 0, 0)),
                pl.BlockSpec((K * K, Cout, Cin), lambda b: (0, 0, 0)),
                pl.BlockSpec((Cout, Cin), lambda b: (0, 0)),
                pl.BlockSpec((Cin, 1), lambda b: (0, 0)),
                pl.BlockSpec((Cout, 1), lambda b: (0, 0)),
                pl.BlockSpec((Cout, 1), lambda b: (0, 0)),
            ],
            out_specs=pl.BlockSpec((1, Cout, L), lambda b: (b, 0, 0)),
        ),
        compiler_params=pltpu.CompilerParams(
            dimension_semantics=("parallel",)),
    )(x_flat, masks, w1_k, w2_k, wc_k, b1_k, b2_k, bc_k)

    # (G, Cout, Bt*HW) -> (B, Cout, H, W); free when Bt == 1.
    return (out_flat.reshape(G, Cout, Bt, HW)
            .transpose(0, 2, 1, 3)
            .reshape(B, Cout, H, W))


def _init_params(key, in_features, out_features, kernel_size):
    """Deterministic init mimicking PyTorch Conv2d default (U(+/- 1/sqrt(fan_in)))."""
    K = kernel_size
    ks = jax.random.split(key, 6)

    def u(k, shape, fan_in):
        bound = 1.0 / jnp.sqrt(fan_in)
        return jax.random.uniform(k, shape, jnp.float32, -bound, bound)

    fan1 = in_features * K * K
    fanc = in_features
    return {
        "w1": u(ks[0], (in_features, in_features, K, K), fan1),
        "b1": u(ks[1], (in_features,), fan1),
        "w2": u(ks[2], (out_features, in_features, K, K), fan1),
        "b2": u(ks[3], (out_features,), fan1),
        "wc": u(ks[4], (out_features, in_features, 1, 1), fanc),
        "bc": u(ks[5], (out_features,), fanc),
    }


def _reference(x, params, padding):
    """Pure-JAX NCHW reference mirroring the PyTorch module."""
    relu = lambda t: jnp.maximum(t, 0.0)

    def conv(t, w, p):
        return jax.lax.conv_general_dilated(
            t, w, (1, 1), [(p, p), (p, p)],
            dimension_numbers=("NCHW", "OIHW", "NCHW"))

    out = conv(relu(x), params["w1"], padding) + params["b1"][None, :, None, None]
    out = conv(relu(out), params["w2"], padding) + params["b2"][None, :, None, None]
    out = out + conv(x, params["wc"], 0) + params["bc"][None, :, None, None]
    return out


if __name__ == "__main__":
    B, in_features, out_features = 2, 4, 8
    H = W = 16
    kernel_size, padding = 3, 1

    key = jax.random.PRNGKey(0)
    kx, kp = jax.random.split(key)
    x = jax.random.normal(kx, (B, in_features, H, W), jnp.float32)
    params = _init_params(kp, in_features, out_features, kernel_size)

    ref = _reference(x, params, padding)

    # Default: 2 parallel grid steps (one image each) -- megacore shape for v7x.
    out = jax.block_until_ready(res_block_2d(x, params, kernel_size, padding))
    assert out.shape == (B, out_features, H, W)
    assert jnp.allclose(out, ref, atol=1e-3, rtol=1e-3), (
        float(jnp.max(jnp.abs(out - ref))))

    # Single-TC variant: whole batch packed onto lanes in one grid step
    # (exercises the lane-packed path and the per-image mask tiling).
    out1 = jax.block_until_ready(
        res_block_2d(x, params, kernel_size, padding, grid_steps=1))
    assert jnp.allclose(out1, ref, atol=1e-3, rtol=1e-3), (
        float(jnp.max(jnp.abs(out1 - ref))))

    print("KERNEL_OK")
</pallas_src>

<mosaic_0001>
module attributes {stable_mosaic.version = 11 : i64} {
  func.func @kernel(%arg0: i32, %arg1: memref<1x4x256xf32, #tpu.memory_space<vmem>>, %arg2: memref<9x1x256xf32, #tpu.memory_space<vmem>>, %arg3: memref<9x4x4xf32, #tpu.memory_space<vmem>>, %arg4: memref<9x8x4xf32, #tpu.memory_space<vmem>>, %arg5: memref<8x4xf32, #tpu.memory_space<vmem>>, %arg6: memref<4x1xf32, #tpu.memory_space<vmem>>, %arg7: memref<8x1xf32, #tpu.memory_space<vmem>>, %arg8: memref<8x1xf32, #tpu.memory_space<vmem>>, %arg9: memref<1x8x256xf32, #tpu.memory_space<vmem>>) attributes {dimension_semantics = [#tpu.dimension_semantics<parallel>], iteration_bounds = array<i64: 2>, scalar_prefetch = 0 : i64, scratch_operands = 0 : i64, tpu.core_type = #tpu.core_type<tc>, window_params = [{transform_indices = @transform_0, window_bounds = array<i64: 1, 4, 256>}, {pipeline_mode = #tpu.pipeline_mode<synchronous>, transform_indices = @transform_1, window_bounds = array<i64: 9, 1, 256>}, {pipeline_mode = #tpu.pipeline_mode<synchronous>, transform_indices = @transform_2, window_bounds = array<i64: 9, 4, 4>}, {pipeline_mode = #tpu.pipeline_mode<synchronous>, transform_indices = @transform_3, window_bounds = array<i64: 9, 8, 4>}, {pipeline_mode = #tpu.pipeline_mode<synchronous>, transform_indices = @transform_4, window_bounds = array<i64: 8, 4>}, {pipeline_mode = #tpu.pipeline_mode<synchronous>, transform_indices = @transform_5, window_bounds = array<i64: 4, 1>}, {pipeline_mode = #tpu.pipeline_mode<synchronous>, transform_indices = @transform_6, window_bounds = array<i64: 8, 1>}, {pipeline_mode = #tpu.pipeline_mode<synchronous>, transform_indices = @transform_7, window_bounds = array<i64: 8, 1>}, {transform_indices = @transform_8, window_bounds = array<i64: 1, 8, 256>}]} {
    %c0 = arith.constant 0 : index
    %c0_0 = arith.constant 0 : index
    %c0_1 = arith.constant 0 : index
    %0 = vector.load %arg1[%c0, %c0_0, %c0_1] : memref<1x4x256xf32, #tpu.memory_space<vmem>>, vector<1x4x256xf32>
    %1 = vector.shape_cast %0 : vector<1x4x256xf32> to vector<4x256xf32>
    %c0_2 = arith.constant 0 : index
    %c0_3 = arith.constant 0 : index
    %c0_4 = arith.constant 0 : index
    %2 = vector.load %arg2[%c0_2, %c0_3, %c0_4] : memref<9x1x256xf32, #tpu.memory_space<vmem>>, vector<9x1x256xf32>
    %cst = arith.constant 5.000000e-01 : f32
    %3 = vector.broadcast %cst : f32 to vector<9x1x256xf32>
    %4 = arith.cmpf ogt, %2, %3 : vector<9x1x256xf32>
    %c0_5 = arith.constant 0 : index
    %c0_6 = arith.constant 0 : index
    %c0_7 = arith.constant 0 : index
    %5 = vector.load %arg3[%c0_5, %c0_6, %c0_7] : memref<9x4x4xf32, #tpu.memory_space<vmem>>, vector<9x4x4xf32>
    %c0_8 = arith.constant 0 : index
    %c0_9 = arith.constant 0 : index
    %c0_10 = arith.constant 0 : index
    %6 = vector.load %arg4[%c0_8, %c0_9, %c0_10] : memref<9x8x4xf32, #tpu.memory_space<vmem>>, vector<9x8x4xf32>
    %c0_11 = arith.constant 0 : index
    %c0_12 = arith.constant 0 : index
    %7 = vector.load %arg5[%c0_11, %c0_12] : memref<8x4xf32, #tpu.memory_space<vmem>>, vector<8x4xf32>
    %c0_13 = arith.constant 0 : index
    %c0_14 = arith.constant 0 : index
    %8 = vector.load %arg6[%c0_13, %c0_14] : memref<4x1xf32, #tpu.memory_space<vmem>>, vector<4x1xf32>
    %c0_15 = arith.constant 0 : index
    %c0_16 = arith.constant 0 : index
    %9 = vector.load %arg7[%c0_15, %c0_16] : memref<8x1xf32, #tpu.memory_space<vmem>>, vector<8x1xf32>
    %c0_17 = arith.constant 0 : index
    %c0_18 = arith.constant 0 : index
    %10 = vector.load %arg8[%c0_17, %c0_18] : memref<8x1xf32, #tpu.memory_space<vmem>>, vector<8x1xf32>
    %cst_19 = arith.constant 0.000000e+00 : f32
    %11 = vector.broadcast %cst_19 : f32 to vector<4x256xf32>
    %12 = arith.maximumf %1, %11 : vector<4x256xf32>
    %c17_i32 = arith.constant 17 : i32
    %13 = tpu.dynamic_rotate %12 by %c17_i32 dim 1 : vector<4x256xf32>, i32 -> vector<4x256xf32>
    %14 = vector.extract_strided_slice %4 {offsets = [0, 0, 0], sizes = [1, 1, 256], strides = [1, 1, 1]} : vector<9x1x256xi1> to vector<1x1x256xi1>
    %15 = vector.shape_cast %14 : vector<1x1x256xi1> to vector<1x256xi1>
    %cst_20 = arith.constant 0.000000e+00 : f32
    %16 = vector.shape_cast %15 : vector<1x256xi1> to vector<1x256xi1>
    %17 = vector.broadcast %16 : vector<1x256xi1> to vector<4x256xi1>
    %18 = vector.broadcast %cst_20 : f32 to vector<4x256xf32>
    %19 = arith.select %17, %13, %18 : vector<4x256xi1>, vector<4x256xf32>
    %20 = vector.extract_strided_slice %5 {offsets = [0, 0, 0], sizes = [1, 4, 4], strides = [1, 1, 1]} : vector<9x4x4xf32> to vector<1x4x4xf32>
    %21 = vector.shape_cast %20 : vector<1x4x4xf32> to vector<4x4xf32>
    %cst_21 = arith.constant dense<0.000000e+00> : vector<4x256xf32>
    %22 = tpu.matmul %21, %19, %cst_21 {dimension_numbers = #tpu.dot_dimension_numbers<[1], [0], [0], [1], [0, 0, 1, 1], [], []>} : vector<4x4xf32>, vector<4x256xf32>, vector<4x256xf32> -> vector<4x256xf32>
    %23 = vector.broadcast %8 : vector<4x1xf32> to vector<4x256xf32>
    %24 = arith.addf %22, %23 : vector<4x256xf32>
    %c16_i32 = arith.constant 16 : i32
    %25 = tpu.dynamic_rotate %12 by %c16_i32 dim 1 : vector<4x256xf32>, i32 -> vector<4x256xf32>
    %26 = vector.extract_strided_slice %4 {offsets = [1, 0, 0], sizes = [1, 1, 256], strides = [1, 1, 1]} : vector<9x1x256xi1> to vector<1x1x256xi1>
    %27 = vector.shape_cast %26 : vector<1x1x256xi1> to vector<1x256xi1>
    %cst_22 = arith.constant 0.000000e+00 : f32
    %28 = vector.shape_cast %27 : vector<1x256xi1> to vector<1x256xi1>
    %29 = vector.broadcast %28 : vector<1x256xi1> to vector<4x256xi1>
    %30 = vector.broadcast %cst_22 : f32 to vector<4x256xf32>
    %31 = arith.select %29, %25, %30 : vector<4x256xi1>, vector<4x256xf32>
    %32 = vector.extract_strided_slice %5 {offsets = [1, 0, 0], sizes = [1, 4, 4], strides = [1, 1, 1]} : vector<9x4x4xf32> to vector<1x4x4xf32>
    %33 = vector.shape_cast %32 : vector<1x4x4xf32> to vector<4x4xf32>
    %cst_23 = arith.constant dense<0.000000e+00> : vector<4x256xf32>
    %34 = tpu.matmul %33, %31, %cst_23 {dimension_numbers = #tpu.dot_dimension_numbers<[1], [0], [0], [1], [0, 0, 1, 1], [], []>} : vector<4x4xf32>, vector<4x256xf32>, vector<4x256xf32> -> vector<4x256xf32>
    %35 = arith.addf %24, %34 : vector<4x256xf32>
    %c15_i32 = arith.constant 15 : i32
    %36 = tpu.dynamic_rotate %12 by %c15_i32 dim 1 : vector<4x256xf32>, i32 -> vector<4x256xf32>
    %37 = vector.extract_strided_slice %4 {offsets = [2, 0, 0], sizes = [1, 1, 256], strides = [1, 1, 1]} : vector<9x1x256xi1> to vector<1x1x256xi1>
    %38 = vector.shape_cast %37 : vector<1x1x256xi1> to vector<1x256xi1>
    %cst_24 = arith.constant 0.000000e+00 : f32
    %39 = vector.shape_cast %38 : vector<1x256xi1> to vector<1x256xi1>
    %40 = vector.broadcast %39 : vector<1x256xi1> to vector<4x256xi1>
    %41 = vector.broadcast %cst_24 : f32 to vector<4x256xf32>
    %42 = arith.select %40, %36, %41 : vector<4x256xi1>, vector<4x256xf32>
    %43 = vector.extract_strided_slice %5 {offsets = [2, 0, 0], sizes = [1, 4, 4], strides = [1, 1, 1]} : vector<9x4x4xf32> to vector<1x4x4xf32>
    %44 = vector.shape_cast %43 : vector<1x4x4xf32> to vector<4x4xf32>
    %cst_25 = arith.constant dense<0.000000e+00> : vector<4x256xf32>
    %45 = tpu.matmul %44, %42, %cst_25 {dimension_numbers = #tpu.dot_dimension_numbers<[1], [0], [0], [1], [0, 0, 1, 1], [], []>} : vector<4x4xf32>, vector<4x256xf32>, vector<4x256xf32> -> vector<4x256xf32>
    %46 = arith.addf %35, %45 : vector<4x256xf32>
    %c1_i32 = arith.constant 1 : i32
    %47 = tpu.dynamic_rotate %12 by %c1_i32 dim 1 : vector<4x256xf32>, i32 -> vector<4x256xf32>
    %48 = vector.extract_strided_slice %4 {offsets = [3, 0, 0], sizes = [1, 1, 256], strides = [1, 1, 1]} : vector<9x1x256xi1> to vector<1x1x256xi1>
    %49 = vector.shape_cast %48 : vector<1x1x256xi1> to vector<1x256xi1>
    %cst_26 = arith.constant 0.000000e+00 : f32
    %50 = vector.shape_cast %49 : vector<1x256xi1> to vector<1x256xi1>
    %51 = vector.broadcast %50 : vector<1x256xi1> to vector<4x256xi1>
    %52 = vector.broadcast %cst_26 : f32 to vector<4x256xf32>
    %53 = arith.select %51, %47, %52 : vector<4x256xi1>, vector<4x256xf32>
    %54 = vector.extract_strided_slice %5 {offsets = [3, 0, 0], sizes = [1, 4, 4], strides = [1, 1, 1]} : vector<9x4x4xf32> to vector<1x4x4xf32>
    %55 = vector.shape_cast %54 : vector<1x4x4xf32> to vector<4x4xf32>
    %cst_27 = arith.constant dense<0.000000e+00> : vector<4x256xf32>
    %56 = tpu.matmul %55, %53, %cst_27 {dimension_numbers = #tpu.dot_dimension_numbers<[1], [0], [0], [1], [0, 0, 1, 1], [], []>} : vector<4x4xf32>, vector<4x256xf32>, vector<4x256xf32> -> vector<4x256xf32>
    %57 = arith.addf %46, %56 : vector<4x256xf32>
    %58 = vector.extract_strided_slice %5 {offsets = [4, 0, 0], sizes = [1, 4, 4], strides = [1, 1, 1]} : vector<9x4x4xf32> to vector<1x4x4xf32>
    %59 = vector.shape_cast %58 : vector<1x4x4xf32> to vector<4x4xf32>
    %cst_28 = arith.constant dense<0.000000e+00> : vector<4x256xf32>
    %60 = tpu.matmul %59, %12, %cst_28 {dimension_numbers = #tpu.dot_dimension_numbers<[1], [0], [0], [1], [0, 0, 1, 1], [], []>} : vector<4x4xf32>, vector<4x256xf32>, vector<4x256xf32> -> vector<4x256xf32>
    %61 = arith.addf %57, %60 : vector<4x256xf32>
    %c255_i32 = arith.constant 255 : i32
    %62 = tpu.dynamic_rotate %12 by %c255_i32 dim 1 : vector<4x256xf32>, i32 -> vector<4x256xf32>
    %63 = vector.extract_strided_slice %4 {offsets = [5, 0, 0], sizes = [1, 1, 256], strides = [1, 1, 1]} : vector<9x1x256xi1> to vector<1x1x256xi1>
    %64 = vector.shape_cast %63 : vector<1x1x256xi1> to vector<1x256xi1>
    %cst_29 = arith.constant 0.000000e+00 : f32
    %65 = vector.shape_cast %64 : vector<1x256xi1> to vector<1x256xi1>
    %66 = vector.broadcast %65 : vector<1x256xi1> to vector<4x256xi1>
    %67 = vector.broadcast %cst_29 : f32 to vector<4x256xf32>
    %68 = arith.select %66, %62, %67 : vector<4x256xi1>, vector<4x256xf32>
    %69 = vector.extract_strided_slice %5 {offsets = [5, 0, 0], sizes = [1, 4, 4], strides = [1, 1, 1]} : vector<9x4x4xf32> to vector<1x4x4xf32>
    %70 = vector.shape_cast %69 : vector<1x4x4xf32> to vector<4x4xf32>
    %cst_30 = arith.constant dense<0.000000e+00> : vector<4x256xf32>
    %71 = tpu.matmul %70, %68, %cst_30 {dimension_numbers = #tpu.dot_dimension_numbers<[1], [0], [0], [1], [0, 0, 1, 1], [], []>} : vector<4x4xf32>, vector<4x256xf32>, vector<4x256xf32> -> vector<4x256xf32>
    %72 = arith.addf %61, %71 : vector<4x256xf32>
    %c241_i32 = arith.constant 241 : i32
    %73 = tpu.dynamic_rotate %12 by %c241_i32 dim 1 : vector<4x256xf32>, i32 -> vector<4x256xf32>
    %74 = vector.extract_strided_slice %4 {offsets = [6, 0, 0], sizes = [1, 1, 256], strides = [1, 1, 1]} : vector<9x1x256xi1> to vector<1x1x256xi1>
    %75 = vector.shape_cast %74 : vector<1x1x256xi1> to vector<1x256xi1>
    %cst_31 = arith.constant 0.000000e+00 : f32
    %76 = vector.shape_cast %75 : vector<1x256xi1> to vector<1x256xi1>
    %77 = vector.broadcast %76 : vector<1x256xi1> to vector<4x256xi1>
    %78 = vector.broadcast %cst_31 : f32 to vector<4x256xf32>
    %79 = arith.select %77, %73, %78 : vector<4x256xi1>, vector<4x256xf32>
    %80 = vector.extract_strided_slice %5 {offsets = [6, 0, 0], sizes = [1, 4, 4], strides = [1, 1, 1]} : vector<9x4x4xf32> to vector<1x4x4xf32>
    %81 = vector.shape_cast %80 : vector<1x4x4xf32> to vector<4x4xf32>
    %cst_32 = arith.constant dense<0.000000e+00> : vector<4x256xf32>
    %82 = tpu.matmul %81, %79, %cst_32 {dimension_numbers = #tpu.dot_dimension_numbers<[1], [0], [0], [1], [0, 0, 1, 1], [], []>} : vector<4x4xf32>, vector<4x256xf32>, vector<4x256xf32> -> vector<4x256xf32>
    %83 = arith.addf %72, %82 : vector<4x256xf32>
    %c240_i32 = arith.constant 240 : i32
    %84 = tpu.dynamic_rotate %12 by %c240_i32 dim 1 : vector<4x256xf32>, i32 -> vector<4x256xf32>
    %85 = vector.extract_strided_slice %4 {offsets = [7, 0, 0], sizes = [1, 1, 256], strides = [1, 1, 1]} : vector<9x1x256xi1> to vector<1x1x256xi1>
    %86 = vector.shape_cast %85 : vector<1x1x256xi1> to vector<1x256xi1>
    %cst_33 = arith.constant 0.000000e+00 : f32
    %87 = vector.shape_cast %86 : vector<1x256xi1> to vector<1x256xi1>
    %88 = vector.broadcast %87 : vector<1x256xi1> to vector<4x256xi1>
    %89 = vector.broadcast %cst_33 : f32 to vector<4x256xf32>
    %90 = arith.select %88, %84, %89 : vector<4x256xi1>, vector<4x256xf32>
    %91 = vector.extract_strided_slice %5 {offsets = [7, 0, 0], sizes = [1, 4, 4], strides = [1, 1, 1]} : vector<9x4x4xf32> to vector<1x4x4xf32>
    %92 = vector.shape_cast %91 : vector<1x4x4xf32> to vector<4x4xf32>
    %cst_34 = arith.constant dense<0.000000e+00> : vector<4x256xf32>
    %93 = tpu.matmul %92, %90, %cst_34 {dimension_numbers = #tpu.dot_dimension_numbers<[1], [0], [0], [1], [0, 0, 1, 1], [], []>} : vector<4x4xf32>, vector<4x256xf32>, vector<4x256xf32> -> vector<4x256xf32>
    %94 = arith.addf %83, %93 : vector<4x256xf32>
    %c239_i32 = arith.constant 239 : i32
    %95 = tpu.dynamic_rotate %12 by %c239_i32 dim 1 : vector<4x256xf32>, i32 -> vector<4x256xf32>
    %96 = vector.extract_strided_slice %4 {offsets = [8, 0, 0], sizes = [1, 1, 256], strides = [1, 1, 1]} : vector<9x1x256xi1> to vector<1x1x256xi1>
    %97 = vector.shape_cast %96 : vector<1x1x256xi1> to vector<1x256xi1>
    %cst_35 = arith.constant 0.000000e+00 : f32
    %98 = vector.shape_cast %97 : vector<1x256xi1> to vector<1x256xi1>
    %99 = vector.broadcast %98 : vector<1x256xi1> to vector<4x256xi1>
    %100 = vector.broadcast %cst_35 : f32 to vector<4x256xf32>
    %101 = arith.select %99, %95, %100 : vector<4x256xi1>, vector<4x256xf32>
    %102 = vector.extract_strided_slice %5 {offsets = [8, 0, 0], sizes = [1, 4, 4], strides = [1, 1, 1]} : vector<9x4x4xf32> to vector<1x4x4xf32>
    %103 = vector.shape_cast %102 : vector<1x4x4xf32> to vector<4x4xf32>
    %cst_36 = arith.constant dense<0.000000e+00> : vector<4x256xf32>
    %104 = tpu.matmul %103, %101, %cst_36 {dimension_numbers = #tpu.dot_dimension_numbers<[1], [0], [0], [1], [0, 0, 1, 1], [], []>} : vector<4x4xf32>, vector<4x256xf32>, vector<4x256xf32> -> vector<4x256xf32>
    %105 = arith.addf %94, %104 : vector<4x256xf32>
    %cst_37 = arith.constant 0.000000e+00 : f32
    %106 = vector.broadcast %cst_37 : f32 to vector<4x256xf32>
    %107 = arith.maximumf %105, %106 : vector<4x256xf32>
    %c17_i32_38 = arith.constant 17 : i32
    %108 = tpu.dynamic_rotate %107 by %c17_i32_38 dim 1 : vector<4x256xf32>, i32 -> vector<4x256xf32>
    %109 = vector.extract_strided_slice %4 {offsets = [0, 0, 0], sizes = [1, 1, 256], strides = [1, 1, 1]} : vector<9x1x256xi1> to vector<1x1x256xi1>
    %110 = vector.shape_cast %109 : vector<1x1x256xi1> to vector<1x256xi1>
    %cst_39 = arith.constant 0.000000e+00 : f32
    %111 = vector.shape_cast %110 : vector<1x256xi1> to vector<1x256xi1>
    %112 = vector.broadcast %111 : vector<1x256xi1> to vector<4x256xi1>
    %113 = vector.broadcast %cst_39 : f32 to vector<4x256xf32>
    %114 = arith.select %112, %108, %113 : vector<4x256xi1>, vector<4x256xf32>
    %115 = vector.extract_strided_slice %6 {offsets = [0, 0, 0], sizes = [1, 8, 4], strides = [1, 1, 1]} : vector<9x8x4xf32> to vector<1x8x4xf32>
    %116 = vector.shape_cast %115 : vector<1x8x4xf32> to vector<8x4xf32>
    %cst_40 = arith.constant dense<0.000000e+00> : vector<8x256xf32>
    %117 = tpu.matmul %116, %114, %cst_40 {dimension_numbers = #tpu.dot_dimension_numbers<[1], [0], [0], [1], [0, 0, 1, 1], [], []>} : vector<8x4xf32>, vector<4x256xf32>, vector<8x256xf32> -> vector<8x256xf32>
    %118 = vector.broadcast %9 : vector<8x1xf32> to vector<8x256xf32>
    %119 = arith.addf %117, %118 : vector<8x256xf32>
    %c16_i32_41 = arith.constant 16 : i32
    %120 = tpu.dynamic_rotate %107 by %c16_i32_41 dim 1 : vector<4x256xf32>, i32 -> vector<4x256xf32>
    %121 = vector.extract_strided_slice %4 {offsets = [1, 0, 0], sizes = [1, 1, 256], strides = [1, 1, 1]} : vector<9x1x256xi1> to vector<1x1x256xi1>
    %122 = vector.shape_cast %121 : vector<1x1x256xi1> to vector<1x256xi1>
    %cst_42 = arith.constant 0.000000e+00 : f32
    %123 = vector.shape_cast %122 : vector<1x256xi1> to vector<1x256xi1>
    %124 = vector.broadcast %123 : vector<1x256xi1> to vector<4x256xi1>
    %125 = vector.broadcast %cst_42 : f32 to vector<4x256xf32>
    %126 = arith.select %124, %120, %125 : vector<4x256xi1>, vector<4x256xf32>
    %127 = vector.extract_strided_slice %6 {offsets = [1, 0, 0], sizes = [1, 8, 4], strides = [1, 1, 1]} : vector<9x8x4xf32> to vector<1x8x4xf32>
    %128 = vector.shape_cast %127 : vector<1x8x4xf32> to vector<8x4xf32>
    %cst_43 = arith.constant dense<0.000000e+00> : vector<8x256xf32>
    %129 = tpu.matmul %128, %126, %cst_43 {dimension_numbers = #tpu.dot_dimension_numbers<[1], [0], [0], [1], [0, 0, 1, 1], [], []>} : vector<8x4xf32>, vector<4x256xf32>, vector<8x256xf32> -> vector<8x256xf32>
    %130 = arith.addf %119, %129 : vector<8x256xf32>
    %c15_i32_44 = arith.constant 15 : i32
    %131 = tpu.dynamic_rotate %107 by %c15_i32_44 dim 1 : vector<4x256xf32>, i32 -> vector<4x256xf32>
    %132 = vector.extract_strided_slice %4 {offsets = [2, 0, 0], sizes = [1, 1, 256], strides = [1, 1, 1]} : vector<9x1x256xi1> to vector<1x1x256xi1>
    %133 = vector.shape_cast %132 : vector<1x1x256xi1> to vector<1x256xi1>
    %cst_45 = arith.constant 0.000000e+00 : f32
    %134 = vector.shape_cast %133 : vector<1x256xi1> to vector<1x256xi1>
    %135 = vector.broadcast %134 : vector<1x256xi1> to vector<4x256xi1>
    %136 = vector.broadcast %cst_45 : f32 to vector<4x256xf32>
    %137 = arith.select %135, %131, %136 : vector<4x256xi1>, vector<4x256xf32>
    %138 = vector.extract_strided_slice %6 {offsets = [2, 0, 0], sizes = [1, 8, 4], strides = [1, 1, 1]} : vector<9x8x4xf32> to vector<1x8x4xf32>
    %139 = vector.shape_cast %138 : vector<1x8x4xf32> to vector<8x4xf32>
    %cst_46 = arith.constant dense<0.000000e+00> : vector<8x256xf32>
    %140 = tpu.matmul %139, %137, %cst_46 {dimension_numbers = #tpu.dot_dimension_numbers<[1], [0], [0], [1], [0, 0, 1, 1], [], []>} : vector<8x4xf32>, vector<4x256xf32>, vector<8x256xf32> -> vector<8x256xf32>
    %141 = arith.addf %130, %140 : vector<8x256xf32>
    %c1_i32_47 = arith.constant 1 : i32
    %142 = tpu.dynamic_rotate %107 by %c1_i32_47 dim 1 : vector<4x256xf32>, i32 -> vector<4x256xf32>
    %143 = vector.extract_strided_slice %4 {offsets = [3, 0, 0], sizes = [1, 1, 256], strides = [1, 1, 1]} : vector<9x1x256xi1> to vector<1x1x256xi1>
    %144 = vector.shape_cast %143 : vector<1x1x256xi1> to vector<1x256xi1>
    %cst_48 = arith.constant 0.000000e+00 : f32
    %145 = vector.shape_cast %144 : vector<1x256xi1> to vector<1x256xi1>
    %146 = vector.broadcast %145 : vector<1x256xi1> to vector<4x256xi1>
    %147 = vector.broadcast %cst_48 : f32 to vector<4x256xf32>
    %148 = arith.select %146, %142, %147 : vector<4x256xi1>, vector<4x256xf32>
    %149 = vector.extract_strided_slice %6 {offsets = [3, 0, 0], sizes = [1, 8, 4], strides = [1, 1, 1]} : vector<9x8x4xf32> to vector<1x8x4xf32>
    %150 = vector.shape_cast %149 : vector<1x8x4xf32> to vector<8x4xf32>
    %cst_49 = arith.constant dense<0.000000e+00> : vector<8x256xf32>
    %151 = tpu.matmul %150, %148, %cst_49 {dimension_numbers = #tpu.dot_dimension_numbers<[1], [0], [0], [1], [0, 0, 1, 1], [], []>} : vector<8x4xf32>, vector<4x256xf32>, vector<8x256xf32> -> vector<8x256xf32>
    %152 = arith.addf %141, %151 : vector<8x256xf32>
    %153 = vector.extract_strided_slice %6 {offsets = [4, 0, 0], sizes = [1, 8, 4], strides = [1, 1, 1]} : vector<9x8x4xf32> to vector<1x8x4xf32>
    %154 = vector.shape_cast %153 : vector<1x8x4xf32> to vector<8x4xf32>
    %cst_50 = arith.constant dense<0.000000e+00> : vector<8x256xf32>
    %155 = tpu.matmul %154, %107, %cst_50 {dimension_numbers = #tpu.dot_dimension_numbers<[1], [0], [0], [1], [0, 0, 1, 1], [], []>} : vector<8x4xf32>, vector<4x256xf32>, vector<8x256xf32> -> vector<8x256xf32>
    %156 = arith.addf %152, %155 : vector<8x256xf32>
    %c255_i32_51 = arith.constant 255 : i32
    %157 = tpu.dynamic_rotate %107 by %c255_i32_51 dim 1 : vector<4x256xf32>, i32 -> vector<4x256xf32>
    %158 = vector.extract_strided_slice %4 {offsets = [5, 0, 0], sizes = [1, 1, 256], strides = [1, 1, 1]} : vector<9x1x256xi1> to vector<1x1x256xi1>
    %159 = vector.shape_cast %158 : vector<1x1x256xi1> to vector<1x256xi1>
    %cst_52 = arith.constant 0.000000e+00 : f32
    %160 = vector.shape_cast %159 : vector<1x256xi1> to vector<1x256xi1>
    %161 = vector.broadcast %160 : vector<1x256xi1> to vector<4x256xi1>
    %162 = vector.broadcast %cst_52 : f32 to vector<4x256xf32>
    %163 = arith.select %161, %157, %162 : vector<4x256xi1>, vector<4x256xf32>
    %164 = vector.extract_strided_slice %6 {offsets = [5, 0, 0], sizes = [1, 8, 4], strides = [1, 1, 1]} : vector<9x8x4xf32> to vector<1x8x4xf32>
    %165 = vector.shape_cast %164 : vector<1x8x4xf32> to vector<8x4xf32>
    %cst_53 = arith.constant dense<0.000000e+00> : vector<8x256xf32>
    %166 = tpu.matmul %165, %163, %cst_53 {dimension_numbers = #tpu.dot_dimension_numbers<[1], [0], [0], [1], [0, 0, 1, 1], [], []>} : vector<8x4xf32>, vector<4x256xf32>, vector<8x256xf32> -> vector<8x256xf32>
    %167 = arith.addf %156, %166 : vector<8x256xf32>
    %c241_i32_54 = arith.constant 241 : i32
    %168 = tpu.dynamic_rotate %107 by %c241_i32_54 dim 1 : vector<4x256xf32>, i32 -> vector<4x256xf32>
    %169 = vector.extract_strided_slice %4 {offsets = [6, 0, 0], sizes = [1, 1, 256], strides = [1, 1, 1]} : vector<9x1x256xi1> to vector<1x1x256xi1>
    %170 = vector.shape_cast %169 : vector<1x1x256xi1> to vector<1x256xi1>
    %cst_55 = arith.constant 0.000000e+00 : f32
    %171 = vector.shape_cast %170 : vector<1x256xi1> to vector<1x256xi1>
    %172 = vector.broadcast %171 : vector<1x256xi1> to vector<4x256xi1>
    %173 = vector.broadcast %cst_55 : f32 to vector<4x256xf32>
    %174 = arith.select %172, %168, %173 : vector<4x256xi1>, vector<4x256xf32>
    %175 = vector.extract_strided_slice %6 {offsets = [6, 0, 0], sizes = [1, 8, 4], strides = [1, 1, 1]} : vector<9x8x4xf32> to vector<1x8x4xf32>
    %176 = vector.shape_cast %175 : vector<1x8x4xf32> to vector<8x4xf32>
    %cst_56 = arith.constant dense<0.000000e+00> : vector<8x256xf32>
    %177 = tpu.matmul %176, %174, %cst_56 {dimension_numbers = #tpu.dot_dimension_numbers<[1], [0], [0], [1], [0, 0, 1, 1], [], []>} : vector<8x4xf32>, vector<4x256xf32>, vector<8x256xf32> -> vector<8x256xf32>
    %178 = arith.addf %167, %177 : vector<8x256xf32>
    %c240_i32_57 = arith.constant 240 : i32
    %179 = tpu.dynamic_rotate %107 by %c240_i32_57 dim 1 : vector<4x256xf32>, i32 -> vector<4x256xf32>
    %180 = vector.extract_strided_slice %4 {offsets = [7, 0, 0], sizes = [1, 1, 256], strides = [1, 1, 1]} : vector<9x1x256xi1> to vector<1x1x256xi1>
    %181 = vector.shape_cast %180 : vector<1x1x256xi1> to vector<1x256xi1>
    %cst_58 = arith.constant 0.000000e+00 : f32
    %182 = vector.shape_cast %181 : vector<1x256xi1> to vector<1x256xi1>
    %183 = vector.broadcast %182 : vector<1x256xi1> to vector<4x256xi1>
    %184 = vector.broadcast %cst_58 : f32 to vector<4x256xf32>
    %185 = arith.select %183, %179, %184 : vector<4x256xi1>, vector<4x256xf32>
    %186 = vector.extract_strided_slice %6 {offsets = [7, 0, 0], sizes = [1, 8, 4], strides = [1, 1, 1]} : vector<9x8x4xf32> to vector<1x8x4xf32>
    %187 = vector.shape_cast %186 : vector<1x8x4xf32> to vector<8x4xf32>
    %cst_59 = arith.constant dense<0.000000e+00> : vector<8x256xf32>
    %188 = tpu.matmul %187, %185, %cst_59 {dimension_numbers = #tpu.dot_dimension_numbers<[1], [0], [0], [1], [0, 0, 1, 1], [], []>} : vector<8x4xf32>, vector<4x256xf32>, vector<8x256xf32> -> vector<8x256xf32>
    %189 = arith.addf %178, %188 : vector<8x256xf32>
    %c239_i32_60 = arith.constant 239 : i32
    %190 = tpu.dynamic_rotate %107 by %c239_i32_60 dim 1 : vector<4x256xf32>, i32 -> vector<4x256xf32>
    %191 = vector.extract_strided_slice %4 {offsets = [8, 0, 0], sizes = [1, 1, 256], strides = [1, 1, 1]} : vector<9x1x256xi1> to vector<1x1x256xi1>
    %192 = vector.shape_cast %191 : vector<1x1x256xi1> to vector<1x256xi1>
    %cst_61 = arith.constant 0.000000e+00 : f32
    %193 = vector.shape_cast %192 : vector<1x256xi1> to vector<1x256xi1>
    %194 = vector.broadcast %193 : vector<1x256xi1> to vector<4x256xi1>
    %195 = vector.broadcast %cst_61 : f32 to vector<4x256xf32>
    %196 = arith.select %194, %190, %195 : vector<4x256xi1>, vector<4x256xf32>
    %197 = vector.extract_strided_slice %6 {offsets = [8, 0, 0], sizes = [1, 8, 4], strides = [1, 1, 1]} : vector<9x8x4xf32> to vector<1x8x4xf32>
    %198 = vector.shape_cast %197 : vector<1x8x4xf32> to vector<8x4xf32>
    %cst_62 = arith.constant dense<0.000000e+00> : vector<8x256xf32>
    %199 = tpu.matmul %198, %196, %cst_62 {dimension_numbers = #tpu.dot_dimension_numbers<[1], [0], [0], [1], [0, 0, 1, 1], [], []>} : vector<8x4xf32>, vector<4x256xf32>, vector<8x256xf32> -> vector<8x256xf32>
    %200 = arith.addf %189, %199 : vector<8x256xf32>
    %cst_63 = arith.constant dense<0.000000e+00> : vector<8x256xf32>
    %201 = tpu.matmul %7, %1, %cst_63 {dimension_numbers = #tpu.dot_dimension_numbers<[1], [0], [0], [1], [0, 0, 1, 1], [], []>} : vector<8x4xf32>, vector<4x256xf32>, vector<8x256xf32> -> vector<8x256xf32>
    %202 = vector.broadcast %10 : vector<8x1xf32> to vector<8x256xf32>
    %203 = arith.addf %201, %202 : vector<8x256xf32>
    %204 = arith.addf %200, %203 : vector<8x256xf32>
    %c0_64 = arith.constant 0 : index
    %c0_65 = arith.constant 0 : index
    %c0_66 = arith.constant 0 : index
    %205 = vector.load %arg9[%c0_64, %c0_65, %c0_66] : memref<1x8x256xf32, #tpu.memory_space<vmem>>, vector<1x8x256xf32>
    %206 = vector.shape_cast %205 : vector<1x8x256xf32> to vector<8x256xf32>
    %207 = vector.shape_cast %204 : vector<8x256xf32> to vector<1x8x256xf32>
    tpu.vector_store %arg9[%c0_64, %c0_65, %c0_66], %207 {strides = array<i32>} : memref<1x8x256xf32, #tpu.memory_space<vmem>>, vector<1x8x256xf32>,
    return
  }
  func.func @transform_0(%arg0: i32) -> (i32, i32, i32) {
    %c0_i32 = arith.constant 0 : i32
    %c0_i32_0 = arith.constant 0 : i32
    %c0_i32_1 = arith.constant 0 : i32
    return %arg0, %c0_i32, %c0_i32_0 : i32, i32, i32
  }
  func.func @transform_1(%arg0: i32) -> (i32, i32, i32) {
    %c0_i32 = arith.constant 0 : i32
    %c0_i32_0 = arith.constant 0 : i32
    %c0_i32_1 = arith.constant 0 : i32
    %c0_i32_2 = arith.constant 0 : i32
    return %c0_i32, %c0_i32_0, %c0_i32_1 : i32, i32, i32
  }
  func.func @transform_2(%arg0: i32) -> (i32, i32, i32) {
    %c0_i32 = arith.constant 0 : i32
    %c0_i32_0 = arith.constant 0 : i32
    %c0_i32_1 = arith.constant 0 : i32
    %c0_i32_2 = arith.constant 0 : i32
    return %c0_i32, %c0_i32_0, %c0_i32_1 : i32, i32, i32
  }
  func.func @transform_3(%arg0: i32) -> (i32, i32, i32) {
    %c0_i32 = arith.constant 0 : i32
    %c0_i32_0 = arith.constant 0 : i32
    %c0_i32_1 = arith.constant 0 : i32
    %c0_i32_2 = arith.constant 0 : i32
    return %c0_i32, %c0_i32_0, %c0_i32_1 : i32, i32, i32
  }
  func.func @transform_4(%arg0: i32) -> (i32, i32) {
    %c0_i32 = arith.constant 0 : i32
    %c0_i32_0 = arith.constant 0 : i32
    %c0_i32_1 = arith.constant 0 : i32
    return %c0_i32, %c0_i32_0 : i32, i32
  }
  func.func @transform_5(%arg0: i32) -> (i32, i32) {
    %c0_i32 = arith.constant 0 : i32
    %c0_i32_0 = arith.constant 0 : i32
    %c0_i32_1 = arith.constant 0 : i32
    return %c0_i32, %c0_i32_0 : i32, i32
  }
  func.func @transform_6(%arg0: i32) -> (i32, i32) {
    %c0_i32 = arith.constant 0 : i32
    %c0_i32_0 = arith.constant 0 : i32
    %c0_i32_1 = arith.constant 0 : i32
    return %c0_i32, %c0_i32_0 : i32, i32
  }
  func.func @transform_7(%arg0: i32) -> (i32, i32) {
    %c0_i32 = arith.constant 0 : i32
    %c0_i32_0 = arith.constant 0 : i32
    %c0_i32_1 = arith.constant 0 : i32
    return %c0_i32, %c0_i32_0 : i32, i32
  }
  func.func @transform_8(%arg0: i32) -> (i32, i32, i32) {
    %c0_i32 = arith.constant 0 : i32
    %c0_i32_0 = arith.constant 0 : i32
    %c0_i32_1 = arith.constant 0 : i32
    return %arg0, %c0_i32, %c0_i32_0 : i32, i32, i32
  }
}

</mosaic_0001>

<bundles_post_ra>
// kernel: tpu_custom_call.1
= control target key start
LH: loop header
LB: loop body
LE: loop exit
PB: predicated region body
PF: predicated region fallthrough
CT: control target
= control target key end

     0   :  { %13 = vsyncpa [#allocation3], 0  ;;  %s2908_s0 = inlined_call_operand.vmem [shape: f32[2,4,256], index: 0, kind: input, shape index: {}]   ;;  %s2909_s1 = inlined_call_operand.vmem [shape: f32[9,1,256], index: 1, kind: input, shape index: {}]   ;;  %s2910_s2 = inlined_call_operand.vmem [shape: f32[9,4,4], index: 2, kind: input, shape index: {}]   ;;  %s2911_s3 = inlined_call_operand.vmem [shape: f32[9,8,4], index: 3, kind: input, shape index: {}]   ;;  %s2912_s4 = inlined_call_operand.vmem [shape: f32[8,4], index: 4, kind: input, shape index: {}]   ;;  %s2913_s5 = inlined_call_operand.vmem [shape: f32[4,1], index: 5, kind: input, shape index: {}]   ;;  %s2914_s6 = inlined_call_operand.vmem [shape: f32[8,1], index: 6, kind: input, shape index: {}]   ;;  %s2915_s7 = inlined_call_operand.vmem [shape: f32[8,1], index: 7, kind: input, shape index: {}]   ;;  %s2916_s8 = inlined_call_operand.hbm [shape: f32[2,8,256], index: 8, kind: output, shape index: {}]  }
   0x1   :  { %15 = vsyncpa [#allocation3 + $0x1], 0  ;;  %s2298_s27 = smov 0   ;;  %s2300_s28 = smov 0  }
   0x2   :  { %s2302_s29 = smov 0   ;;  %s2304_s30 = smov 0  }
   0x3 LB: > { %s2319_s9 = sadd.s32 4294967295, %s2242_s30   ;;  %s2040_s10 = sadd.s32 4294967294, %s2242_s30   ;;  %s2242_s30 = sphi %s2304_s30, %s2951_s30   ;;  %s2238_s29 = sphi %s2302_s29, %s2950_s29   ;;  %s2234_s28 = sphi %s2300_s28, %s2949_s28   ;;  %s2230_s27 = sphi %s2298_s27, %s2948_s27  }
   0x4   : > { %s2323_s11 = sadd.s32 1, %s2242_s30   ;;  %s201_s12 = sadd.s32 1, %s2238_s29 }
   0x5   : > { %s198_s13 = ssub.s32 %s2242_s30, %s2323_s11  ;;  %p211_p0 = scmp.ne.s32.totalorder %s2238_s29, %s2234_s28 }
   0x6   : > { %p199_p1 = scmp.eq.s32.totalorder %s198_s13, 0  ;;  %p212_p2 = scmp.eq.s32.totalorder %s2319_s9, 1 }
   0x7   : > { %p217_p3 = scmp.ne.s32.totalorder %s2234_s28, %s2230_s27  ;;  %p218_p4 = scmp.eq.s32.totalorder %s2040_s10, 1 }
   0x8   : > { %s2334_s14 = scalar_select %p199_p1, %s2238_s29, %s201_s12  }
   0x9   : > { %p2336_p5 = por %p212_p2, %p211_p0  ;;  %p2340_p6 = por %p218_p4, %p217_p3 }
   0xa   : > { %p2043_p7 = scmp.ge.s32.totalorder %s2242_s30, 1  ;;  %p265_p8 = scmp.lt.s32.totalorder %s2242_s30, 3 }
   0xc   : > { %p266_p9 = pnand %p2043_p7, %p265_p8 }
   0xd   : > { %p299_p10 = scmp.lt.s32.totalorder (!%p266_p9), %s2319_s9, 1  ;;  %s2244_s22 = smov (!%p266_p9), 17  }
   0xe   : > { %269 = sbr.rel (%p266_p9) target bundleno = 1637 (0x665), region = 52  ;;  %s2245_s25 = smov (!%p266_p9), 16  }
   0xf   : > { %s2246_s12 = smov (!%p266_p9), 15   ;;  %s2248_s24 = smov (!%p266_p9), 127  }
  0x10   : > { %s2249_s19 = smov (!%p266_p9), 113   ;;  %s2921_s10 = smov (!%p266_p9), 112  }
  0x11   : > { %s2251_s23 = smov (!%p266_p9), 111   ;;  %s296_s13 = sand.u32 (!%p266_p9), 1, %s2234_s28  }
  0x13   : > { %s300_s17 = scalar_select %p299_p10, %s2319_s9, 1  ;;  %v354_v4 = vlaneseq  ;;  %v2365_v7 = vld [vmem:[%s2909_s1] sm:$0x3]  ;;  %vm364_vm1 = vcmask 1040384   ;;  %vm366_vm2 = vcmask 1041409   ;;  %vm369_vm3 = vcmask 1042434  }
  0x14   : > { %vm372_vm4 = vcmask 1043459   ;;  %vm313_vm5 = vcmp.gt.f32.partialorder %v2365_v7, 0.5  ;;  %vm405_vm6 = vcmask 1043456   ;;  %v2393_v28 = vld [vmem:[%s2909_s1 + $0x2] sm:$0x3]  ;;  %vm401_vm11 = vcmask 31744  }
  0x15   : > { %s2128_s18 = sshll.u32 %s300_s17, 3  ;;  %v2359_v6 = vand.u32 127, %v354_v4  ;;  %vm314_vm8 = vcmp.gt.f32.partialorder %v2393_v28, 0.5  ;;  %v2421_v49 = vld [vmem:[%s2909_s1 + $0x4] sm:$0x3] }
  0x16   : > { %s303_s21 = scalar_lea.vmem %s2908_s0, %s2128_s18  ;;  %vm315_vm10 = vcmp.gt.f32.partialorder %v2421_v49, 0.5  ;;  %s2247_s18 = smov 1  }
  0x17   : > { %v2351_v0 = vld [vmem:[%s303_s21] sm:$0xff]  ;;  %vm356_vm0 = vcmp.lt.s32.totalorder %v2359_v6, 17  ;;  %vm459_vm7 = vcmp.lt.s32.totalorder %v2359_v6, 16  ;;  %vm553_vm9 = vcmp.lt.s32.totalorder %v2359_v6, 15  ;;  %vm647_vm12 = vcmp.lt.s32.totalorder %v2359_v6, 1 }
  0x18   : > { %v2354_v1 = vmax.f32 %v2351_v0, 0.0  ;;  %vm793_vm14 = vcmp.lt.s32.totalorder %v2359_v6, 127 }
  0x1a   : > { %345 = vst [vmem:[#allocation1] ss:$2 sm:$0xff] %v2354_v1 }
  0x21   : > { %v346_v2 = vld.sshfl [vmem:[#allocation1] sm:$0xff pattern:$0x75316420]  ;;  %v347_v3 = vld.sshfl [vmem:[#allocation1 + $0x8] sm:$0xff pattern:$0x75316420] }
  0x22   : > { %350 = vrot.lane.b32.xlu0 %v346_v2, %s2244_s22 }
  0x2a   : > { %352 = vrot.lane.b32.xlu0 %v347_v3, %s2244_s22 }
  0x94   : > { %v351_v5 = vpop.permute.xlu0 %350 }
  0x9c   : > { %v353_v8 = vpop.permute.xlu0 %352 }
  0x9d   : > { %v357_v9 = vsel %vm356_vm0, %v351_v5, %v353_v8  ;;  %v358_v11 = vsel %vm356_vm0, %v353_v8, %v351_v5 }
  0x9e   : > { %v363_v10 = vrot.slane %v357_v9, 7  ;;  %v321_v9 = vld [vmem:[%s2910_s2] sm:$0xf] }
  0xa0   : > { %v365_v12 = vsel %vm364_vm1, %v358_v11, %v363_v10  ;;  %v367_v13 = vsel %vm366_vm2, %v358_v11, %v363_v10  ;;  %v370_v14 = vsel %vm369_vm3, %v358_v11, %v363_v10  ;;  %v373_v15 = vsel %vm372_vm4, %v358_v11, %v363_v10  ;;  %v2454_v10 = vld [vmem:[%s2909_s1 + $0x6] sm:$0x3] }
  0xa1   : > { %v368_v16 = vrot.slane %v367_v13, 1  ;;  %v371_v17 = vrot.slane %v370_v14, 2  ;;  %v374_v18 = vrot.slane %v373_v15, 3  ;;  %v379_v19 = vsel %vm313_vm5, %v365_v12, 0.0 }
  0xa2   : > { %392 = vst [vmem:[#allocation1] ss:$9 sm:$0xff] %v379_v19  ;;  %vm2918_vm13 = vcmp.gt.f32.partialorder %v2454_v10, 0.5 }
  0xa3   : > { %v380_v20 = vsel %vm313_vm5, %v368_v16, 0.0  ;;  %v381_v21 = vsel %vm313_vm5, %v371_v17, 0.0  ;;  %v382_v22 = vsel %vm313_vm5, %v374_v18, 0.0 }
  0xa4   : > { %394 = vst [vmem:[#allocation1 + $0x1] ss:$9 sm:$0xff] %v380_v20 }
  0xa5   : > { %396 = vst [vmem:[#allocation1 + $0x2] ss:$9 sm:$0xff] %v381_v21 }
  0xa6   : > { %398 = vst [vmem:[#allocation1 + $0x3] ss:$9 sm:$0xff] %v382_v22 }
  0xad   : > { %v399_v23 = vld [vmem:[#allocation1] sm:$0xff]  ;;  %v400_v24 = vld [vmem:[#allocation1 + $0x9] sm:$0xff] }
  0xae   : > { %450 = vst [vmem:[#allocation1] ss:$2 sm:$0xff] %v2354_v1  ;;  %2047 = vmatpush.msk.msra.mxu0 %vm405_vm6, %v399_v23  ;;  %2049 = vmatpush.msk.msra.mxu1 %vm405_vm6, %v400_v24 }
  0xaf   : > { %2048 = vmatmul.msk.f32.vlgmr.msra.gmra.mxu0 %vm401_vm11, %v321_v9  ;;  %2050 = vmatmul.msk.f32.vlgmr.msra.gmra.mxu1 %vm401_vm11, %v321_v9 }
  0xb5   : > { %v451_v25 = vld.sshfl [vmem:[#allocation1] sm:$0xff pattern:$0x75316420]  ;;  %v452_v26 = vld.sshfl [vmem:[#allocation1 + $0x8] sm:$0xff pattern:$0x75316420] }
  0xb6   : > { %455 = vrot.lane.b32.xlu1 %v451_v25, %s2245_s25 }
  0xbe   : > { %457 = vrot.lane.b32.xlu1 %v452_v26, %s2245_s25 }
 0x128   : > { %v456_v27 = vpop.permute.xlu1 %455 }
 0x130   : > { %v458_v29 = vpop.permute.xlu1 %457 }
 0x131   : > { %v460_v30 = vsel %vm459_vm7, %v456_v27, %v458_v29  ;;  %v461_v32 = vsel %vm459_vm7, %v458_v29, %v456_v27 }
 0x132   : > { %v466_v31 = vrot.slane %v460_v30, 7 }
 0x134   : > { %v467_v33 = vsel %vm364_vm1, %v461_v32, %v466_v31  ;;  %v468_v34 = vsel %vm366_vm2, %v461_v32, %v466_v31  ;;  %v470_v35 = vsel %vm369_vm3, %v461_v32, %v466_v31  ;;  %v472_v36 = vsel %vm372_vm4, %v461_v32, %v466_v31 }
 0x135   : > { %v469_v37 = vrot.slane %v468_v34, 1  ;;  %v471_v38 = vrot.slane %v470_v35, 2  ;;  %v473_v39 = vrot.slane %v472_v36, 3  ;;  %v478_v40 = vsel %vm314_vm8, %v467_v33, 0.0  ;;  %v322_v34 = vld [vmem:[%s2910_s2 + $0x4] sm:$0xf] }
 0x136   : > { %486 = vst [vmem:[#allocation1] ss:$9 sm:$0xff] %v478_v40  ;;  %v2490_v35 = vld [vmem:[%s2909_s1 + $0xa] sm:$0x3] }
 0x137   : > { %v479_v41 = vsel %vm314_vm8, %v469_v37, 0.0  ;;  %v480_v42 = vsel %vm314_vm8, %v471_v38, 0.0  ;;  %v481_v43 = vsel %vm314_vm8, %v473_v39, 0.0  ;;  %vm2917_vm15 = vcmp.gt.f32.partialorder %v2490_v35, 0.5 }
 0x138   : > { %488 = vst [vmem:[#allocation1 + $0x1] ss:$9 sm:$0xff] %v479_v41 }
 0x139   : > { %490 = vst [vmem:[#allocation1 + $0x2] ss:$9 sm:$0xff] %v480_v42 }
 0x13a   : > { %492 = vst [vmem:[#allocation1 + $0x3] ss:$9 sm:$0xff] %v481_v43 }
 0x141   : > { %v493_v44 = vld [vmem:[#allocation1] sm:$0xff]  ;;  %v494_v45 = vld [vmem:[#allocation1 + $0x9] sm:$0xff] }
 0x142   : > { %544 = vst [vmem:[#allocation1] ss:$2 sm:$0xff] %v2354_v1  ;;  %2051 = vmatpush.msk.msra.mxu2 %vm405_vm6, %v493_v44  ;;  %2053 = vmatpush.msk.msra.mxu3 %vm405_vm6, %v494_v45 }
 0x143   : > { %2052 = vmatmul.msk.f32.vlgmr.msra.gmra.mxu2 %vm401_vm11, %v322_v34  ;;  %2054 = vmatmul.msk.f32.vlgmr.msra.gmra.mxu3 %vm401_vm11, %v322_v34 }
 0x149   : > { %v545_v46 = vld.sshfl [vmem:[#allocation1] sm:$0xff pattern:$0x75316420]  ;;  %v546_v47 = vld.sshfl [vmem:[#allocation1 + $0x8] sm:$0xff pattern:$0x75316420] }
 0x14a   : > { %549 = vrot.lane.b32.xlu2 %v545_v46, %s2246_s12 }
 0x152   : > { %551 = vrot.lane.b32.xlu2 %v546_v47, %s2246_s12 }
 0x1a4   : > { %v550_v48 = vpop.permute.xlu2 %549 }
 0x1ac   : > { %v552_v50 = vpop.permute.xlu2 %551 }
 0x1ad   : > { %v554_v51 = vsel %vm553_vm9, %v550_v48, %v552_v50  ;;  %v555_v53 = vsel %vm553_vm9, %v552_v50, %v550_v48 }
 0x1ae   : > { %v560_v52 = vrot.slane %v554_v51, 7 }
 0x1b0   : > { %v561_v54 = vsel %vm364_vm1, %v555_v53, %v560_v52  ;;  %v562_v55 = vsel %vm366_vm2, %v555_v53, %v560_v52  ;;  %v564_v56 = vsel %vm369_vm3, %v555_v53, %v560_v52  ;;  %v566_v57 = vsel %vm372_vm4, %v555_v53, %v560_v52 }
 0x1b1   : > { %v563_v58 = vrot.slane %v562_v55, 1  ;;  %v565_v59 = vrot.slane %v564_v56, 2  ;;  %v567_v60 = vrot.slane %v566_v57, 3  ;;  %v572_v61 = vsel %vm315_vm10, %v561_v54, 0.0  ;;  %v323_v57 = vld [vmem:[%s2910_s2 + $0x8] sm:$0xf] }
 0x1b2   : > { %580 = vst [vmem:[#allocation1] ss:$9 sm:$0xff] %v572_v61 }
 0x1b3   : > { %v573_v62 = vsel %vm315_vm10, %v563_v58, 0.0  ;;  %v574_v63 = vsel %vm315_vm10, %v565_v59, 0.0  ;;  %v575_v2 = vsel %vm315_vm10, %v567_v60, 0.0  ;;  %v2523_v58 = vld [vmem:[%s2909_s1 + $0xc] sm:$0x3] }
 0x1b4   : > { %582 = vst [vmem:[#allocation1 + $0x1] ss:$9 sm:$0xff] %v573_v62 }
 0x1b5   : > { %584 = vst [vmem:[#allocation1 + $0x2] ss:$9 sm:$0xff] %v574_v63 }
 0x1b6   : > { %586 = vst [vmem:[#allocation1 + $0x3] ss:$9 sm:$0xff] %v575_v2 }
 0x1bd   : > { %v587_v3 = vld [vmem:[#allocation1] sm:$0xff]  ;;  %v588_v4 = vld [vmem:[#allocation1 + $0x9] sm:$0xff] }
 0x1be   : > { %638 = vst [vmem:[#allocation1] ss:$2 sm:$0xff] %v2354_v1  ;;  %2055 = vmatpush.msk.msrb.mxu0 %vm405_vm6, %v587_v3  ;;  %2057 = vmatpush.msk.msrb.mxu1 %vm405_vm6, %v588_v4 }
 0x1bf   : > { %2056 = vmatmul.msk.f32.vlgmr.msrb.gmra.mxu0 %vm401_vm11, %v323_v57  ;;  %2058 = vmatmul.msk.f32.vlgmr.msrb.gmra.mxu1 %vm401_vm11, %v323_v57 }
 0x1c5   : > { %v639_v5 = vld.sshfl [vmem:[#allocation1] sm:$0xff pattern:$0x75316420]  ;;  %v640_v8 = vld.sshfl [vmem:[#allocation1 + $0x8] sm:$0xff pattern:$0x75316420] }
 0x1c6   : > { %645 = vrot.lane.b32.xlu1 %v640_v8, %s2247_s18  ;;  %643 = vrot.lane.b32.xlu0 %v639_v5, %s2247_s18 }
 0x238   : > { %v646_v11 = vpop.permute.xlu1 %645  ;;  %v644_v12 = vpop.permute.xlu0 %643 }
 0x239   : > { %v648_v13 = vsel %vm647_vm12, %v644_v12, %v646_v11  ;;  %v649_v15 = vsel %vm647_vm12, %v646_v11, %v644_v12 }
 0x23a   : > { %v654_v14 = vrot.slane %v648_v13, 7 }
 0x23c   : > { %v655_v16 = vsel %vm364_vm1, %v649_v15, %v654_v14  ;;  %v656_v17 = vsel %vm366_vm2, %v649_v15, %v654_v14  ;;  %v658_v18 = vsel %vm369_vm3, %v649_v15, %v654_v14  ;;  %v660_v19 = vsel %vm372_vm4, %v649_v15, %v654_v14 }
 0x23d   : > { %v657_v20 = vrot.slane %v656_v17, 1  ;;  %v659_v21 = vrot.slane %v658_v18, 2  ;;  %v661_v22 = vrot.slane %v660_v19, 3  ;;  %v666_v23 = vsel %vm2918_vm13, %v655_v16, 0.0 }
 0x23e   : > { %674 = vst [vmem:[#allocation1] ss:$9 sm:$0xff] %v666_v23 }
 0x23f   : > { %v667_v24 = vsel %vm2918_vm13, %v657_v20, 0.0  ;;  %v668_v25 = vsel %vm2918_vm13, %v659_v21, 0.0  ;;  %v669_v26 = vsel %vm2918_vm13, %v661_v22, 0.0  ;;  %vm2919_vm13 = vcmp.gt.f32.partialorder %v2523_v58, 0.5  ;;  %v324_v20 = vld [vmem:[%s2910_s2 + $0xc] sm:$0xf] }
 0x240   : > { %676 = vst [vmem:[#allocation1 + $0x1] ss:$9 sm:$0xff] %v667_v24  ;;  %v2556_v21 = vld [vmem:[%s2909_s1 + $0xe] sm:$0x3] }
 0x241   : > { %678 = vst [vmem:[#allocation1 + $0x2] ss:$9 sm:$0xff] %v668_v25 }
 0x242   : > { %680 = vst [vmem:[#allocation1 + $0x3] ss:$9 sm:$0xff] %v669_v26 }
 0x249   : > { %v681_v27 = vld [vmem:[#allocation1] sm:$0xff]  ;;  %v682_v29 = vld [vmem:[#allocation1 + $0x9] sm:$0xff] }
 0x24a   : > { %732 = vst [vmem:[#allocation1] ss:$2 sm:$0xff] %v2354_v1  ;;  %2059 = vmatpush.msk.msrb.mxu2 %vm405_vm6, %v681_v27  ;;  %2061 = vmatpush.msk.msrb.mxu3 %vm405_vm6, %v682_v29 }
 0x24b   : > { %2060 = vmatmul.msk.f32.vlgmr.msrb.gmra.mxu2 %vm401_vm11, %v324_v20  ;;  %2062 = vmatmul.msk.f32.vlgmr.msrb.gmra.mxu3 %vm401_vm11, %v324_v20 }
 0x251   : > { %v733_v30 = vld.sshfl [vmem:[#allocation1] sm:$0xff pattern:$0x75316420]  ;;  %v734_v31 = vld.sshfl [vmem:[#allocation1 + $0x8] sm:$0xff pattern:$0x75316420] }
 0x252   : > { %784 = vst [vmem:[#allocation1] ss:$2 sm:$0xff] %v2354_v1  ;;  %2063 = vmatpush.msk.msra.mxu0 %vm405_vm6, %v733_v30  ;;  %2065 = vmatpush.msk.msra.mxu1 %vm405_vm6, %v734_v31 }
 0x259   : > { %v785_v32 = vld.sshfl [vmem:[#allocation1] sm:$0xff pattern:$0x75316420]  ;;  %v786_v33 = vld.sshfl [vmem:[#allocation1 + $0x8] sm:$0xff pattern:$0x75316420] }
 0x25a   : > { %791 = vrot.lane.b32.xlu0 %v786_v33, %s2248_s24  ;;  %789 = vrot.lane.b32.xlu2 %v785_v32, %s2248_s24 }
 0x2b4   : > { %v790_v36 = vpop.permute.xlu2 %789 }
 0x2cc   : > { %v792_v37 = vpop.permute.xlu0 %791 }
 0x2cd   : > { %v795_v38 = vsel %vm793_vm14, %v792_v37, %v790_v36  ;;  %v794_v40 = vsel %vm793_vm14, %v790_v36, %v792_v37 }
 0x2ce   : > { %v800_v39 = vrot.slane %v795_v38, 7 }
 0x2d0   : > { %v801_v41 = vsel %vm364_vm1, %v794_v40, %v800_v39  ;;  %v802_v42 = vsel %vm366_vm2, %v794_v40, %v800_v39  ;;  %v804_v43 = vsel %vm369_vm3, %v794_v40, %v800_v39  ;;  %v806_v44 = vsel %vm372_vm4, %v794_v40, %v800_v39 }
 0x2d1   : > { %v803_v45 = vrot.slane %v802_v42, 1  ;;  %v805_v46 = vrot.slane %v804_v43, 2  ;;  %v807_v47 = vrot.slane %v806_v44, 3  ;;  %v812_v48 = vsel %vm2917_vm15, %v801_v41, 0.0  ;;  %v326_v44 = vld [vmem:[%s2910_s2 + $0x14] sm:$0xf] }
 0x2d2   : > { %820 = vst [vmem:[#allocation1] ss:$9 sm:$0xff] %v812_v48  ;;  %v327_v48 = vld [vmem:[%s2910_s2 + $0x18] sm:$0xf] }
 0x2d3   : > { %v813_v50 = vsel %vm2917_vm15, %v803_v45, 0.0  ;;  %v814_v51 = vsel %vm2917_vm15, %v805_v46, 0.0  ;;  %v815_v52 = vsel %vm2917_vm15, %v807_v47, 0.0  ;;  %vm2920_vm15 = vcmp.lt.s32.totalorder %v2359_v6, 113  ;;  %v325_v45 = vld [vmem:[%s2910_s2 + $0x10] sm:$0xf] }
 0x2d4   : > { %822 = vst [vmem:[#allocation1 + $0x1] ss:$9 sm:$0xff] %v813_v50  ;;  %2066 = vmatmul.msk.f32.vlgmr.msra.gmra.mxu1 %vm401_vm11, %v325_v45  ;;  %v2252_v46 = vmov 0   ;;  %2064 = vmatmul.msk.f32.vlgmr.msra.gmra.mxu0 %vm401_vm11, %v325_v45  ;;  %v328_v47 = vld [vmem:[%s2910_s2 + $0x1c] sm:$0xf] }
 0x2d5   : > { %824 = vst [vmem:[#allocation1 + $0x2] ss:$9 sm:$0xff] %v814_v51  ;;  %2178 = vset.pattern.permute.xlu1 %v2252_v46  ;;  %2179 = vset.pattern.permute.xlu0 %v2252_v46  ;;  %v2607_v50 = vld [vmem:[%s2909_s1 + $0x10] sm:$0x3] }
 0x2d6   : > { %826 = vst [vmem:[#allocation1 + $0x3] ss:$9 sm:$0xff] %v815_v52 }
 0x2dd   : > { %v827_v53 = vld [vmem:[#allocation1] sm:$0xff]  ;;  %v828_v54 = vld [vmem:[#allocation1 + $0x9] sm:$0xff] }
 0x2de   : > { %878 = vst [vmem:[#allocation1] ss:$2 sm:$0xff] %v2354_v1  ;;  %2067 = vmatpush.msk.msra.mxu2 %vm405_vm6, %v827_v53  ;;  %2069 = vmatpush.msk.msra.mxu3 %vm405_vm6, %v828_v54 }
 0x2df   : > { %2070 = vmatmul.msk.f32.vlgmr.msra.gmra.mxu3 %vm401_vm11, %v326_v44  ;;  %2068 = vmatmul.msk.f32.vlgmr.msra.gmra.mxu2 %vm401_vm11, %v326_v44 }
 0x2e5   : > { %v879_v55 = vld.sshfl [vmem:[#allocation1] sm:$0xff pattern:$0x75316420]  ;;  %v880_v56 = vld.sshfl [vmem:[#allocation1 + $0x8] sm:$0xff pattern:$0x75316420] }
 0x2e6   : > { %885 = vrot.lane.b32.xlu2 %v880_v56, %s2249_s19  ;;  %883 = vrot.lane.b32.xlu1 %v879_v55, %s2249_s19 }
 0x340   : > { %v886_v59 = vpop.permute.xlu2 %885 }
 0x358   : > { %v884_v60 = vpop.permute.xlu1 %883 }
 0x359   : > { %v889_v61 = vsel %vm2920_vm15, %v886_v59, %v884_v60  ;;  %v888_v63 = vsel %vm2920_vm15, %v884_v60, %v886_v59  ;;  %vm2923_vm15 = vcmp.gt.f32.partialorder %v2556_v21, 0.5 }
 0x35a   : > { %v894_v62 = vrot.slane %v889_v61, 7 }
 0x35c   : > { %v895_v2 = vsel %vm364_vm1, %v888_v63, %v894_v62  ;;  %v896_v3 = vsel %vm366_vm2, %v888_v63, %v894_v62  ;;  %v898_v4 = vsel %vm369_vm3, %v888_v63, %v894_v62  ;;  %v900_v5 = vsel %vm372_vm4, %v888_v63, %v894_v62 }
 0x35d   : > { %v897_v8 = vrot.slane %v896_v3, 1  ;;  %v899_v9 = vrot.slane %v898_v4, 2  ;;  %v901_v11 = vrot.slane %v900_v5, 3  ;;  %v906_v12 = vsel %vm2919_vm13, %v895_v2, 0.0 }
 0x35e   : > { %914 = vst [vmem:[#allocation1] ss:$9 sm:$0xff] %v906_v12  ;;  %v447_v12 = vpop.f32.mrf.mxu1 }
 0x35f   : > { %v907_v13 = vsel %vm2919_vm13, %v897_v8, 0.0  ;;  %v908_v14 = vsel %vm2919_vm13, %v899_v9, 0.0  ;;  %v909_v15 = vsel %vm2919_vm13, %v901_v11, 0.0  ;;  %vm2924_vm13 = vcmp.lt.s32.totalorder %v2359_v6, 112  ;;  %v329_v8 = vld [vmem:[%s2910_s2 + $0x20] sm:$0xf] }
 0x360   : > { %916 = vst [vmem:[#allocation1 + $0x1] ss:$9 sm:$0xff] %v907_v13  ;;  %v427_v13 = vpop.f32.mrf.mxu0 }
 0x361   : > { %918 = vst [vmem:[#allocation1 + $0x2] ss:$9 sm:$0xff] %v908_v14  ;;  %v539_v14 = vpop.f32.mrf.mxu3 }
 0x362   : > { %920 = vst [vmem:[#allocation1 + $0x3] ss:$9 sm:$0xff] %v909_v15  ;;  %v519_v15 = vpop.f32.mrf.mxu2 }
 0x368   : > { %v613_v20 = vpop.f32.mrf.mxu0 }
 0x369   : > { %v921_v16 = vld [vmem:[#allocation1] sm:$0xff]  ;;  %v922_v17 = vld [vmem:[#allocation1 + $0x9] sm:$0xff] }
 0x36a   : > { %972 = vst [vmem:[#allocation1] ss:$2 sm:$0xff] %v2354_v1  ;;  %2071 = vmatpush.msk.msrb.mxu0 %vm405_vm6, %v921_v16  ;;  %2073 = vmatpush.msk.msrb.mxu1 %vm405_vm6, %v922_v17 }
 0x36b   : > { %2074 = vmatmul.msk.f32.vlgmr.msrb.gmra.mxu1 %vm401_vm11, %v327_v48  ;;  %2072 = vmatmul.msk.f32.vlgmr.msrb.gmra.mxu0 %vm401_vm11, %v327_v48 }
 0x371   : > { %v973_v18 = vld.sshfl [vmem:[#allocation1] sm:$0xff pattern:$0x75316420]  ;;  %v974_v19 = vld.sshfl [vmem:[#allocation1 + $0x8] sm:$0xff pattern:$0x75316420] }
 0x372   : > { %979 = vrot.lane.b32.xlu1 %v974_v19, %s2921_s10  ;;  %977 = vrot.lane.b32.xlu0 %v973_v18, %s2921_s10  ;;  %v633_v19 = vpop.f32.mrf.mxu1 }
 0x3e4   : > { %v980_v22 = vpop.permute.xlu1 %979  ;;  %v978_v23 = vpop.permute.xlu0 %977 }
 0x3e5   : > { %v983_v24 = vsel %vm2924_vm13, %v980_v22, %v978_v23  ;;  %v982_v26 = vsel %vm2924_vm13, %v978_v23, %v980_v22  ;;  %vm320_vm13 = vcmp.gt.f32.partialorder %v2607_v50, 0.5  ;;  %v339_v50 = vld [vmem:[%s2912_s4] sm:$0xff] }
 0x3e6   : > { %v988_v25 = vrot.slane %v983_v24, 7  ;;  %v727_v24 = vpop.f32.mrf.mxu3 }
 0x3e8   : > { %v989_v27 = vsel %vm364_vm1, %v982_v26, %v988_v25  ;;  %v990_v29 = vsel %vm366_vm2, %v982_v26, %v988_v25  ;;  %v992_v30 = vsel %vm369_vm3, %v982_v26, %v988_v25  ;;  %v994_v31 = vsel %vm372_vm4, %v982_v26, %v988_v25  ;;  %v707_v25 = vpop.f32.mrf.mxu2 }
 0x3e9   : > { %v991_v32 = vrot.slane %v990_v29, 1  ;;  %v993_v33 = vrot.slane %v992_v30, 2  ;;  %v995_v34 = vrot.slane %v994_v31, 3  ;;  %v1000_v36 = vsel %vm2923_vm15, %v989_v27, 0.0  ;;  %v779_v29 = vpop.f32.mrf.mxu1  ;;  %v759_v30 = vpop.f32.mrf.mxu0 }
 0x3ea   : > { %1008 = vst [vmem:[#allocation1] ss:$9 sm:$0xff] %v1000_v36 }
 0x3eb   : > { %v1001_v37 = vsel %vm2923_vm15, %v991_v32, 0.0  ;;  %v1002_v38 = vsel %vm2923_vm15, %v993_v33, 0.0  ;;  %v1003_v39 = vsel %vm2923_vm15, %v995_v34, 0.0  ;;  %vm1075_vm15 = vcmp.lt.s32.totalorder %v2359_v6, 111 }
 0x3ec   : > { %1010 = vst [vmem:[#allocation1 + $0x1] ss:$9 sm:$0xff] %v1001_v37 }
 0x3ed   : > { %1012 = vst [vmem:[#allocation1 + $0x2] ss:$9 sm:$0xff] %v1002_v38 }
 0x3ee   : > { %1014 = vst [vmem:[#allocation1 + $0x3] ss:$9 sm:$0xff] %v1003_v39  ;;  %v873_v33 = vpop.f32.mrf.mxu3 }
 0x3f0   : > { %v853_v34 = vpop.f32.mrf.mxu2 }
 0x3f5   : > { %v1015_v40 = vld [vmem:[#allocation1] sm:$0xff]  ;;  %v1016_v41 = vld [vmem:[#allocation1 + $0x9] sm:$0xff] }
 0x3f6   : > { %1066 = vst [vmem:[#allocation1] ss:$2 sm:$0xff] %v2354_v1  ;;  %2075 = vmatpush.msk.msrb.mxu2 %vm405_vm6, %v1015_v40  ;;  %2077 = vmatpush.msk.msrb.mxu3 %vm405_vm6, %v1016_v41  ;;  %v340_v1 = vld [vmem:[%s2913_s5] sm:$0xf]  ;;  %v967_v40 = vpop.f32.mrf.mxu1  ;;  %v947_v41 = vpop.f32.mrf.mxu0 }
 0x3f7   : > { %385 = vperm.xlu1 %2178, %v340_v1   ;;  %2078 = vmatmul.msk.f32.vlgmr.msrb.gmra.mxu3 %vm401_vm11, %v328_v47 }
 0x3f8   : > { %2076 = vmatmul.msk.f32.vlgmr.msrb.gmra.mxu2 %vm401_vm11, %v328_v47 }
 0x3fd   : > { %v1067_v42 = vld.sshfl [vmem:[#allocation1] sm:$0xff pattern:$0x75316420]  ;;  %v1068_v43 = vld.sshfl [vmem:[#allocation1 + $0x8] sm:$0xff pattern:$0x75316420] }
 0x3fe   : > { %1073 = vrot.lane.b32.xlu0 %v1068_v43, %s2251_s23  ;;  %1071 = vrot.lane.b32.xlu2 %v1067_v42, %s2251_s23 }
 0x458   : > { %v1072_v51 = vpop.permute.xlu2 %1071 }
 0x469   : > { %v386_v16 = vpop.permute.xlu1 %385 }
 0x46a   : > { %v428_v17 = vadd.f32 %v427_v13, %v386_v16  ;;  %v448_v18 = vadd.f32 %v447_v12, %v386_v16 }
 0x46c   : > { %v543_v22 = vadd.f32 %v539_v14, %v448_v18  ;;  %v542_v23 = vadd.f32 %v519_v15, %v428_v17 }
 0x46e   : > { %v636_v26 = vadd.f32 %v613_v20, %v542_v23  ;;  %v637_v27 = vadd.f32 %v633_v19, %v543_v22 }
 0x470   : > { %v1074_v52 = vpop.permute.xlu0 %1073  ;;  %v731_v31 = vadd.f32 %v727_v24, %v637_v27  ;;  %v730_v32 = vadd.f32 %v707_v25, %v636_v26 }
 0x471   : > { %v1077_v53 = vsel %vm1075_vm15, %v1074_v52, %v1072_v51  ;;  %v1076_v55 = vsel %vm1075_vm15, %v1072_v51, %v1074_v52 }
 0x472   : > { %v1082_v54 = vrot.slane %v1077_v53, 7  ;;  %v783_v36 = vadd.f32 %v779_v29, %v731_v31  ;;  %v782_v37 = vadd.f32 %v759_v30, %v730_v32  ;;  %v330_v30 = vld [vmem:[%s2911_s3] sm:$0xff] }
 0x474   : > { %v1083_v56 = vsel %vm364_vm1, %v1076_v55, %v1082_v54  ;;  %v1084_v57 = vsel %vm366_vm2, %v1076_v55, %v1082_v54  ;;  %v1086_v59 = vsel %vm369_vm3, %v1076_v55, %v1082_v54  ;;  %v1088_v60 = vsel %vm372_vm4, %v1076_v55, %v1082_v54  ;;  %v342_v55 = vld [vmem:[%s2915_s7] sm:$0xff] }
 0x475   : > { %v1085_v61 = vrot.slane %v1084_v57, 1  ;;  %v1087_v62 = vrot.slane %v1086_v59, 2  ;;  %v1089_v63 = vrot.slane %v1088_v60, 3  ;;  %v1094_v2 = vsel %vm320_vm13, %v1083_v56, 0.0 }
 0x476   : > { %1102 = vst [vmem:[#allocation1] ss:$9 sm:$0xff] %v1094_v2  ;;  %v877_v38 = vadd.f32 %v873_v33, %v783_v36  ;;  %v876_v39 = vadd.f32 %v853_v34, %v782_v37 }
 0x477   : > { %v1095_v3 = vsel %vm320_vm13, %v1085_v61, 0.0  ;;  %v1096_v4 = vsel %vm320_vm13, %v1087_v62, 0.0  ;;  %v1097_v5 = vsel %vm320_vm13, %v1089_v63, 0.0 }
 0x478   : > { %1104 = vst [vmem:[#allocation1 + $0x1] ss:$9 sm:$0xff] %v1095_v3  ;;  %v971_v42 = vadd.f32 %v967_v40, %v877_v38  ;;  %v970_v43 = vadd.f32 %v947_v41, %v876_v39 }
 0x479   : > { %1106 = vst [vmem:[#allocation1 + $0x2] ss:$9 sm:$0xff] %v1096_v4 }
 0x47a   : > { %1108 = vst [vmem:[#allocation1 + $0x3] ss:$9 sm:$0xff] %v1097_v5  ;;  %v1061_v44 = vpop.f32.mrf.mxu3 }
 0x47b   : > { %v1041_v45 = vpop.f32.mrf.mxu2  ;;  %v1065_v1 = vadd.f32 %v1061_v44, %v971_v42 }
 0x47c   : > { %v1064_v46 = vadd.f32 %v1041_v45, %v970_v43 }
 0x481   : > { %v1109_v9 = vld [vmem:[#allocation1] sm:$0xff]  ;;  %v1110_v11 = vld [vmem:[#allocation1 + $0x9] sm:$0xff] }
 0x482   : > { %2079 = vmatpush.msk.msra.mxu0 %vm405_vm6, %v1109_v9  ;;  %2081 = vmatpush.msk.msra.mxu1 %vm405_vm6, %v1110_v11 }
 0x483   : > { %2080 = vmatmul.msk.f32.vlgmr.msra.gmra.mxu0 %vm401_vm11, %v329_v8  ;;  %2082 = vmatmul.msk.f32.vlgmr.msra.gmra.mxu1 %vm401_vm11, %v329_v8 }
 0x500   : > { %v1135_v47 = vpop.f32.mrf.mxu0  ;;  %v1155_v48 = vpop.f32.mrf.mxu1 }
 0x501   : > { %v1158_v51 = vadd.f32 %v1135_v47, %v1064_v46  ;;  %v1159_v52 = vadd.f32 %v1155_v48, %v1065_v1  ;;  %v331_v48 = vld [vmem:[%s2911_s3 + $0x8] sm:$0xff] }
 0x503   : > { %v2633_v53 = vmax.f32 %v1158_v51, 0.0  ;;  %v2635_v54 = vmax.f32 %v1159_v52, 0.0 }
 0x505   : > { %1164 = vrot.lane.b32.xlu0 %v2635_v54, %s2244_s22  ;;  %1251 = vrot.lane.b32.xlu1 %v2633_v53, %s2245_s25 }
 0x506   : > { %1162 = vrot.lane.b32.xlu2 %v2633_v53, %s2244_s22  ;;  %s2927_s22 = smov 112  }
 0x50d   : > { %1337 = vrot.lane.b32.xlu0 %v2633_v53, %s2246_s12  ;;  %1339 = vrot.lane.b32.xlu1 %v2635_v54, %s2246_s12 }
 0x50e   : > { %1253 = vrot.lane.b32.xlu2 %v2635_v54, %s2245_s25  ;;  %s2129_s25 = sshll.u32 %s2319_s9, 4  ;;  %s1965_s9 = scalar_lea.sflag [#allocation3], %s296_s13 }
 0x515   : > { %1425 = vrot.lane.b32.xlu0 %v2635_v54, %s2247_s18  ;;  %1560 = vrot.lane.b32.xlu1 %v2633_v53, %s2248_s24 }
 0x516   : > { %1423 = vrot.lane.b32.xlu2 %v2633_v53, %s2247_s18 }
 0x51d   : > { %1646 = vrot.lane.b32.xlu0 %v2633_v53, %s2249_s19  ;;  %1648 = vrot.lane.b32.xlu1 %v2635_v54, %s2249_s19 }
 0x51e   : > { %1562 = vrot.lane.b32.xlu2 %v2635_v54, %s2248_s24  ;;  %s1976_s24 = scalar_lea.hbm %s2916_s8, %s2129_s25 }
 0x51f   : > { %s1980_s17 = sshll.u32 %s1976_s24, 4  ;;  %s1981_s17 = int_to_ptr.hbm [resolvable:$true] %s1980_s17 }
 0x520   : > { %s2194_s20 = sshra.s32 %s1981_s17, 4  ;;  %s2195_s20 = int_to_ptr.hbm [resolvable:$true] %s2194_s20 }
 0x521   : > { %s2196_s10 = scalar_lea.hbm %s2195_s20, 16  ;;  %p2201_p0 = scmp.lt.s32.totalorder %s2195_s20, %s2916_s8 }
 0x522   : > { %p2197_p11 = scmp.ne.s32.totalorder %s2195_s20, %s2196_s10 }
 0x524   : > { %p2198_p12 = pnand %p2197_p11, %p2336_p5 }
 0x525   : > { %1734 = vrot.lane.b32.xlu0 %v2635_v54, %s2927_s22  ;;  %1818 = vrot.lane.b32.xlu1 %v2633_v53, %s2251_s23 }
 0x526   : > { %1732 = vrot.lane.b32.xlu2 %v2633_v53, %s2927_s22  ;;  %s2044_s22 = sshll.u32 %s296_s13, 4  ;;  %p2199_p13 = pneg %p2198_p12 }
 0x527   : > { %s298_s19 = scalar_lea.vmem [#allocation2], %s2044_s22  ;;  %s2200_s22 = scalar_lea.hbm %s2916_s8, 32 }
 0x528   : > { %p2202_p1 = scmp.lt.s32.totalorder %s2200_s22, %s2196_s10 }
 0x52a   : > { %p2203_p2 = por %p2202_p1, %p2201_p0 }
 0x52c   : > { %p2204_p3 = pnand %p2203_p2, %p2199_p13 }
 0x52d   : > { %1906 = vperm.xlu1 %2178, %v342_v55  }
 0x52e   : > { %1820 = vrot.lane.b32.xlu2 %v2635_v54, %s2251_s23  ;;  %s1978_s23 = sshll.u32 %s298_s19, 4  ;;  %s1979_s23 = int_to_ptr.vmem [resolvable:$true] %s1978_s23 }
 0x560   : > { %v1163_v56 = vpop.permute.xlu2 %1162 }
 0x568   : > { %v1254_v61 = vpop.permute.xlu2 %1253 }
 0x570   : > { %v1424_v44 = vpop.permute.xlu2 %1423 }
 0x577   : > { %v1165_v57 = vpop.permute.xlu0 %1164  ;;  %v1252_v59 = vpop.permute.xlu1 %1251 }
 0x578   : > { %v1166_v60 = vsel %vm356_vm0, %v1163_v56, %v1165_v57  ;;  %v1167_v63 = vsel %vm356_vm0, %v1165_v57, %v1163_v56  ;;  %v1255_v2 = vsel %vm459_vm7, %v1252_v59, %v1254_v61  ;;  %v1256_v18 = vsel %vm459_vm7, %v1254_v61, %v1252_v59 }
 0x579   : > { %v1170_v62 = vrot.slane %v1166_v60, 7  ;;  %v1259_v17 = vrot.slane %v1255_v2, 7  ;;  %vm2928_vm0 = vcmp.gt.f32.partialorder %v2454_v10, 0.5 }
 0x57a   : > { %vm2930_vm7 = vmmov %vm2928_vm0 }
 0x57b   : > { %v1171_v3 = vsel %vm364_vm1, %v1167_v63, %v1170_v62  ;;  %v1172_v4 = vsel %vm366_vm2, %v1167_v63, %v1170_v62  ;;  %v1174_v5 = vsel %vm369_vm3, %v1167_v63, %v1170_v62  ;;  %v1176_v8 = vsel %vm372_vm4, %v1167_v63, %v1170_v62 }
 0x57c   : > { %v1173_v9 = vrot.slane %v1172_v4, 1  ;;  %v1175_v11 = vrot.slane %v1174_v5, 2  ;;  %v1177_v12 = vrot.slane %v1176_v8, 3  ;;  %v1182_v13 = vsel %vm313_vm5, %v1171_v3, 0.0  ;;  %v1563_v4 = vpop.permute.xlu2 %1562 }
 0x57d   : > { %1195 = vst [vmem:[#allocation1] ss:$9 sm:$0xff] %v1182_v13  ;;  %v1261_v19 = vsel %vm366_vm2, %v1256_v18, %v1259_v17  ;;  %v1263_v20 = vsel %vm369_vm3, %v1256_v18, %v1259_v17  ;;  %v1265_v24 = vsel %vm372_vm4, %v1256_v18, %v1259_v17  ;;  %v1260_v25 = vsel %vm364_vm1, %v1256_v18, %v1259_v17 }
 0x57e   : > { %v1183_v14 = vsel %vm313_vm5, %v1173_v9, 0.0  ;;  %v1184_v15 = vsel %vm313_vm5, %v1175_v11, 0.0  ;;  %v1185_v16 = vsel %vm313_vm5, %v1177_v12, 0.0  ;;  %v1262_v26 = vrot.slane %v1261_v19, 1  ;;  %vm2929_vm5 = vmmov %vm2928_vm0 }
 0x57f   : > { %1197 = vst [vmem:[#allocation1 + $0x1] ss:$9 sm:$0xff] %v1183_v14  ;;  %v1338_v22 = vpop.permute.xlu0 %1337  ;;  %v1340_v23 = vpop.permute.xlu1 %1339  ;;  %v1264_v7 = vrot.slane %v1263_v20, 2  ;;  %v1266_v29 = vrot.slane %v1265_v24, 3  ;;  %v1271_v31 = vsel %vm314_vm8, %v1260_v25, 0.0 }
 0x580   : > { %1199 = vst [vmem:[#allocation1 + $0x2] ss:$9 sm:$0xff] %v1184_v15  ;;  %v1341_v27 = vsel %vm553_vm9, %v1338_v22, %v1340_v23  ;;  %v1272_v34 = vsel %vm314_vm8, %v1262_v26, 0.0  ;;  %v1342_v39 = vsel %vm553_vm9, %v1340_v23, %v1338_v22  ;;  %v332_v15 = vld [vmem:[%s2911_s3 + $0x10] sm:$0xff]  ;;  %v334_v26 = vld [vmem:[%s2911_s3 + $0x20] sm:$0xff]  ;;  %vm2932_vm9 = vcmp.lt.s32.totalorder %v2359_v6, 113 }
 0x581   : > { %1201 = vst [vmem:[#allocation1 + $0x3] ss:$9 sm:$0xff] %v1185_v16  ;;  %v1345_v36 = vrot.slane %v1341_v27, 7  ;;  %v1273_v37 = vsel %vm314_vm8, %v1264_v7, 0.0  ;;  %v1274_v38 = vsel %vm314_vm8, %v1266_v29, 0.0  ;;  %vm2931_vm8 = vmmov %vm2928_vm0  ;;  %v341_v29 = vld [vmem:[%s2914_s6] sm:$0xff] }
 0x582   : > { %1188 = vperm.xlu0 %2179, %v341_v29  }
 0x583   : > { %v1347_v40 = vsel %vm366_vm2, %v1342_v39, %v1345_v36  ;;  %v1349_v41 = vsel %vm369_vm3, %v1342_v39, %v1345_v36  ;;  %v1351_v43 = vsel %vm372_vm4, %v1342_v39, %v1345_v36  ;;  %v1346_v45 = vsel %vm364_vm1, %v1342_v39, %v1345_v36 }
 0x584   : > { %v1348_v1 = vrot.slane %v1347_v40, 1  ;;  %v1350_v46 = vrot.slane %v1349_v41, 2  ;;  %v1352_v47 = vrot.slane %v1351_v43, 3  ;;  %v1357_v51 = vsel %vm315_vm10, %v1346_v45, 0.0  ;;  %v1733_v45 = vpop.permute.xlu2 %1732 }
 0x586   : > { %v1358_v56 = vsel %vm315_vm10, %v1348_v1, 0.0  ;;  %v1359_v59 = vsel %vm315_vm10, %v1350_v46, 0.0  ;;  %v1360_v60 = vsel %vm315_vm10, %v1352_v47, 0.0  ;;  %vm2933_vm10 = vcmp.gt.f32.partialorder %v2490_v35, 0.5 }
 0x587   : > { %v1426_v42 = vpop.permute.xlu0 %1425  ;;  %v1561_v2 = vpop.permute.xlu1 %1560 }
 0x588   : > { %v1202_v32 = vld [vmem:[#allocation1] sm:$0xff]  ;;  %v1203_v33 = vld [vmem:[#allocation1 + $0x9] sm:$0xff]  ;;  %v1427_v28 = vsel %vm647_vm12, %v1424_v44, %v1426_v42  ;;  %v1428_v61 = vsel %vm647_vm12, %v1426_v42, %v1424_v44  ;;  %v1565_v49 = vsel %vm793_vm14, %v1563_v4, %v1561_v2  ;;  %v1564_v20 = vsel %vm793_vm14, %v1561_v2, %v1563_v4  ;;  %vm2934_vm12 = vmmov %vm2933_vm10 }
 0x589   : > { %2083 = vmatpush.msk.msra.mxu2 %vm405_vm6, %v1202_v32  ;;  %2085 = vmatpush.msk.msra.mxu3 %vm405_vm6, %v1203_v33  ;;  %1279 = vst [vmem:[#allocation1] ss:$9 sm:$0xff] %v1271_v31  ;;  %v1431_v57 = vrot.slane %v1427_v28, 7  ;;  %v1568_v17 = vrot.slane %v1565_v49, 7  ;;  %v333_v31 = vld [vmem:[%s2911_s3 + $0x18] sm:$0xff]  ;;  %vm2935_vm14 = vmmov %vm2933_vm10 }
 0x58a   : > { %1281 = vst [vmem:[#allocation1 + $0x1] ss:$9 sm:$0xff] %v1272_v34  ;;  %2084 = vmatmul.msk.f32.vlgmr.msra.gmra.mxu2 %vm401_vm11, %v330_v30  ;;  %2086 = vmatmul.msk.f32.vlgmr.msra.gmra.mxu3 %vm401_vm11, %v330_v30 }
 0x58b   : > { %1283 = vst [vmem:[#allocation1 + $0x2] ss:$9 sm:$0xff] %v1273_v37  ;;  %v1433_v62 = vsel %vm366_vm2, %v1428_v61, %v1431_v57  ;;  %v1435_v63 = vsel %vm369_vm3, %v1428_v61, %v1431_v57  ;;  %v1437_v3 = vsel %vm372_vm4, %v1428_v61, %v1431_v57  ;;  %v1432_v5 = vsel %vm364_vm1, %v1428_v61, %v1431_v57 }
 0x58c   : > { %1285 = vst [vmem:[#allocation1 + $0x3] ss:$9 sm:$0xff] %v1274_v38  ;;  %v1434_v8 = vrot.slane %v1433_v62, 1  ;;  %v1436_v9 = vrot.slane %v1435_v63, 2  ;;  %v1438_v11 = vrot.slane %v1437_v3, 3  ;;  %v1443_v12 = vsel %vm2928_vm0, %v1432_v5, 0.0  ;;  %vm2936_vm0 = vmmov %vm2933_vm10  ;;  %v1821_v4 = vpop.permute.xlu2 %1820 }
 0x58d   : > { %v1570_v22 = vsel %vm366_vm2, %v1564_v20, %v1568_v17  ;;  %v1572_v23 = vsel %vm369_vm3, %v1564_v20, %v1568_v17  ;;  %v1569_v10 = vsel %vm364_vm1, %v1564_v20, %v1568_v17 }
 0x58e   : > { %v1444_v16 = vsel %vm2929_vm5, %v1434_v8, 0.0  ;;  %v1445_v18 = vsel %vm2930_vm7, %v1436_v9, 0.0  ;;  %v1446_v19 = vsel %vm2931_vm8, %v1438_v11, 0.0  ;;  %v1571_v25 = vrot.slane %v1570_v22, 1  ;;  %vm2937_vm5 = vmmov %vm2932_vm9  ;;  %v336_v11 = vld [vmem:[%s2911_s3 + $0x30] sm:$0xff] }
 0x58f   : > { %v1649_v24 = vpop.permute.xlu1 %1648  ;;  %v1573_v7 = vrot.slane %v1572_v23, 2  ;;  %v1580_v32 = vsel %vm2933_vm10, %v1569_v10, 0.0  ;;  %vm2938_vm7 = vcmp.lt.s32.totalorder %v2359_v6, 112  ;;  %vm2939_vm8 = vcmp.gt.f32.partialorder %v2523_v58, 0.5 }
 0x590   : > { %v1581_v36 = vsel %vm2934_vm12, %v1571_v25, 0.0  ;;  %vm2941_vm10 = vmmov %vm2939_vm8 }
 0x591   : > { %v1582_v38 = vsel %vm2935_vm14, %v1573_v7, 0.0  ;;  %vm2942_vm12 = vmmov %vm2939_vm8 }
 0x592   : > { %vm2943_vm14 = vmmov %vm2938_vm7 }
 0x593   : > { %v1286_v52 = vld [vmem:[#allocation1] sm:$0xff]  ;;  %v1287_v55 = vld [vmem:[#allocation1 + $0x9] sm:$0xff] }
 0x594   : > { %2087 = vmatpush.msk.msrb.mxu0 %vm405_vm6, %v1286_v52  ;;  %2089 = vmatpush.msk.msrb.mxu1 %vm405_vm6, %v1287_v55  ;;  %1365 = vst [vmem:[#allocation1] ss:$9 sm:$0xff] %v1357_v51 }
 0x595   : > { %1367 = vst [vmem:[#allocation1 + $0x1] ss:$9 sm:$0xff] %v1358_v56  ;;  %2088 = vmatmul.msk.f32.vlgmr.msrb.gmra.mxu0 %vm401_vm11, %v331_v48  ;;  %2090 = vmatmul.msk.f32.vlgmr.msrb.gmra.mxu1 %vm401_vm11, %v331_v48  ;;  %v335_v48 = vld [vmem:[%s2911_s3 + $0x28] sm:$0xff] }
 0x596   : > { %1369 = vst [vmem:[#allocation1 + $0x2] ss:$9 sm:$0xff] %v1359_v59 }
 0x597   : > { %1371 = vst [vmem:[#allocation1 + $0x3] ss:$9 sm:$0xff] %v1360_v60  ;;  %v1819_v2 = vpop.permute.xlu1 %1818 }
 0x598   : > { %v1823_v58 = vsel %vm1075_vm15, %v1821_v4, %v1819_v2 }
 0x59e   : > { %v1372_v13 = vld [vmem:[#allocation1] sm:$0xff]  ;;  %v1373_v14 = vld [vmem:[#allocation1 + $0x9] sm:$0xff] }
 0x59f   : > { %2091 = vmatpush.msk.msrb.mxu2 %vm405_vm6, %v1372_v13  ;;  %2093 = vmatpush.msk.msrb.mxu3 %vm405_vm6, %v1373_v14  ;;  %1451 = vst [vmem:[#allocation1] ss:$9 sm:$0xff] %v1443_v12 }
 0x5a0   : > { %1453 = vst [vmem:[#allocation1 + $0x1] ss:$9 sm:$0xff] %v1444_v16  ;;  %2092 = vmatmul.msk.f32.vlgmr.msrb.gmra.mxu2 %vm401_vm11, %v332_v15  ;;  %2094 = vmatmul.msk.f32.vlgmr.msrb.gmra.mxu3 %vm401_vm11, %v332_v15  ;;  %v1826_v16 = vrot.slane %v1823_v58, 7  ;;  %v1907_v58 = vpop.permute.xlu1 %1906 }
 0x5a1   : > { %2099 = vmatpush.msk.msra.mxu2 %vm405_vm6, %v2633_v53  ;;  %2101 = vmatpush.msk.msra.mxu3 %vm405_vm6, %v2635_v54  ;;  %1455 = vst [vmem:[#allocation1 + $0x2] ss:$9 sm:$0xff] %v1445_v18  ;;  %v1647_v53 = vpop.permute.xlu0 %1646  ;;  %v1574_v54 = vsel %vm372_vm4, %v1564_v20, %v1568_v17 }
 0x5a2   : > { %1457 = vst [vmem:[#allocation1 + $0x3] ss:$9 sm:$0xff] %v1446_v19  ;;  %v1651_v27 = vsel %vm2932_vm9, %v1649_v24, %v1647_v53  ;;  %v1575_v30 = vrot.slane %v1574_v54, 3  ;;  %v1650_v40 = vsel %vm2937_vm5, %v1647_v53, %v1649_v24  ;;  %vm2940_vm9 = vmmov %vm2939_vm8  ;;  %v1822_v19 = vsel %vm1075_vm15, %v1819_v2, %v1821_v4 }
 0x5a3   : > { %v1654_v37 = vrot.slane %v1651_v27, 7  ;;  %v1828_v20 = vsel %vm366_vm2, %v1822_v19, %v1826_v16  ;;  %v1830_v22 = vsel %vm369_vm3, %v1822_v19, %v1826_v16  ;;  %v1832_v23 = vsel %vm372_vm4, %v1822_v19, %v1826_v16 }
 0x5a4   : > { %v1583_v39 = vsel %vm2936_vm0, %v1575_v30, 0.0  ;;  %vm2944_vm0 = vcmp.gt.f32.partialorder %v2556_v21, 0.5  ;;  %v1827_v53 = vsel %vm364_vm1, %v1822_v19, %v1826_v16  ;;  %v1829_v24 = vrot.slane %v1828_v20, 1  ;;  %v337_v21 = vld [vmem:[%s2911_s3 + $0x38] sm:$0xff]  ;;  %v338_v30 = vld [vmem:[%s2911_s3 + $0x40] sm:$0xff] }
 0x5a5   : > { %v1656_v41 = vsel %vm366_vm2, %v1650_v40, %v1654_v37  ;;  %v1658_v42 = vsel %vm369_vm3, %v1650_v40, %v1654_v37  ;;  %v1660_v44 = vsel %vm372_vm4, %v1650_v40, %v1654_v37  ;;  %v1655_v1 = vsel %vm364_vm1, %v1650_v40, %v1654_v37  ;;  %vm2945_vm5 = vmmov %vm2944_vm0 }
 0x5a6   : > { %v1657_v46 = vrot.slane %v1656_v41, 1  ;;  %v1659_v28 = vrot.slane %v1658_v42, 2  ;;  %v1661_v47 = vrot.slane %v1660_v44, 3  ;;  %v1666_v51 = vsel %vm2939_vm8, %v1655_v1, 0.0  ;;  %vm2947_vm8 = vmmov %vm2944_vm0 }
 0x5a7   : > { %v1831_v54 = vrot.slane %v1830_v22, 2  ;;  %v1833_v10 = vrot.slane %v1832_v23, 3  ;;  %v1838_v6 = vsel %vm320_vm13, %v1827_v53, 0.0  ;;  %v1839_v7 = vsel %vm320_vm13, %v1829_v24, 0.0 }
 0x5a8   : > { %2100 = vmatmul.msk.f32.vlgmr.msra.gmra.mxu2 %vm401_vm11, %v334_v26  ;;  %2102 = vmatmul.msk.f32.vlgmr.msra.gmra.mxu3 %vm401_vm11, %v334_v26  ;;  %v1667_v56 = vsel %vm2940_vm9, %v1657_v46, 0.0  ;;  %v1668_v59 = vsel %vm2941_vm10, %v1659_v28, 0.0  ;;  %v1669_v60 = vsel %vm2942_vm12, %v1661_v47, 0.0 }
 0x5a9   : > { %v1458_v33 = vld [vmem:[#allocation1] sm:$0xff]  ;;  %v1459_v34 = vld [vmem:[#allocation1 + $0x9] sm:$0xff]  ;;  %v1735_v43 = vpop.permute.xlu0 %1734  ;;  %v1840_v27 = vsel %vm320_vm13, %v1831_v54, 0.0  ;;  %v1841_v29 = vsel %vm320_vm13, %v1833_v10, 0.0 }
 0x5aa   : > { %2095 = vmatpush.msk.msra.mxu0 %vm405_vm6, %v1458_v33  ;;  %2097 = vmatpush.msk.msra.mxu1 %vm405_vm6, %v1459_v34  ;;  %1588 = vst [vmem:[#allocation1] ss:$9 sm:$0xff] %v1580_v32  ;;  %v1737_v35 = vsel %vm2938_vm7, %v1735_v43, %v1733_v45  ;;  %v1736_v61 = vsel %vm2943_vm14, %v1733_v45, %v1735_v43  ;;  %vm2946_vm7 = vmmov %vm2944_vm0 }
 0x5ab   : > { %1590 = vst [vmem:[#allocation1 + $0x1] ss:$9 sm:$0xff] %v1581_v36  ;;  %2096 = vmatmul.msk.f32.vlgmr.msra.gmra.mxu0 %vm401_vm11, %v333_v31  ;;  %2098 = vmatmul.msk.f32.vlgmr.msra.gmra.mxu1 %vm401_vm11, %v333_v31  ;;  %v1740_v57 = vrot.slane %v1737_v35, 7 }
 0x5ac   : > { %1592 = vst [vmem:[#allocation1 + $0x2] ss:$9 sm:$0xff] %v1582_v38 }
 0x5ad   : > { %1594 = vst [vmem:[#allocation1 + $0x3] ss:$9 sm:$0xff] %v1583_v39  ;;  %v1742_v62 = vsel %vm366_vm2, %v1736_v61, %v1740_v57  ;;  %v1744_v63 = vsel %vm369_vm3, %v1736_v61, %v1740_v57  ;;  %v1746_v3 = vsel %vm372_vm4, %v1736_v61, %v1740_v57  ;;  %v1741_v5 = vsel %vm364_vm1, %v1736_v61, %v1740_v57 }
 0x5ae   : > { %v1743_v8 = vrot.slane %v1742_v62, 1  ;;  %v1745_v9 = vrot.slane %v1744_v63, 2  ;;  %v1747_v49 = vrot.slane %v1746_v3, 3  ;;  %v1752_v12 = vsel %vm2944_vm0, %v1741_v5, 0.0 }
 0x5b0   : > { %v1753_v15 = vsel %vm2945_vm5, %v1743_v8, 0.0  ;;  %v1754_v17 = vsel %vm2946_vm7, %v1745_v9, 0.0  ;;  %v1755_v18 = vsel %vm2947_vm8, %v1747_v49, 0.0 }
 0x5b4   : > { %v1595_v52 = vld [vmem:[#allocation1] sm:$0xff]  ;;  %v1596_v55 = vld [vmem:[#allocation1 + $0x9] sm:$0xff] }
 0x5b5   : > { %2103 = vmatpush.msk.msrb.mxu0 %vm405_vm6, %v1595_v52  ;;  %2105 = vmatpush.msk.msrb.mxu1 %vm405_vm6, %v1596_v55  ;;  %1674 = vst [vmem:[#allocation1] ss:$9 sm:$0xff] %v1666_v51 }
 0x5b6   : > { %1676 = vst [vmem:[#allocation1 + $0x1] ss:$9 sm:$0xff] %v1667_v56  ;;  %2104 = vmatmul.msk.f32.vlgmr.msrb.gmra.mxu0 %vm401_vm11, %v335_v48  ;;  %2106 = vmatmul.msk.f32.vlgmr.msrb.gmra.mxu1 %vm401_vm11, %v335_v48 }
 0x5b7   : > { %1678 = vst [vmem:[#allocation1 + $0x2] ss:$9 sm:$0xff] %v1668_v59 }
 0x5b8   : > { %1680 = vst [vmem:[#allocation1 + $0x3] ss:$9 sm:$0xff] %v1669_v60 }
 0x5bf   : > { %v1681_v13 = vld [vmem:[#allocation1] sm:$0xff]  ;;  %v1682_v14 = vld [vmem:[#allocation1 + $0x9] sm:$0xff] }
 0x5c0   : > { %2107 = vmatpush.msk.msrb.mxu2 %vm405_vm6, %v1681_v13  ;;  %2109 = vmatpush.msk.msrb.mxu3 %vm405_vm6, %v1682_v14  ;;  %1760 = vst [vmem:[#allocation1] ss:$9 sm:$0xff] %v1752_v12 }
 0x5c1   : > { %1762 = vst [vmem:[#allocation1 + $0x1] ss:$9 sm:$0xff] %v1753_v15  ;;  %2108 = vmatmul.msk.f32.vlgmr.msrb.gmra.mxu2 %vm401_vm11, %v336_v11  ;;  %2110 = vmatmul.msk.f32.vlgmr.msrb.gmra.mxu3 %vm401_vm11, %v336_v11 }
 0x5c2   : > { %1764 = vst [vmem:[#allocation1 + $0x2] ss:$9 sm:$0xff] %v1754_v17 }
 0x5c3   : > { %1766 = vst [vmem:[#allocation1 + $0x3] ss:$9 sm:$0xff] %v1755_v18 }
 0x5ca   : > { %v1767_v25 = vld [vmem:[#allocation1] sm:$0xff]  ;;  %v1768_v26 = vld [vmem:[#allocation1 + $0x9] sm:$0xff] }
 0x5cb   : > { %2111 = vmatpush.msk.msra.mxu0 %vm405_vm6, %v1767_v25  ;;  %2113 = vmatpush.msk.msra.mxu1 %vm405_vm6, %v1768_v26  ;;  %1846 = vst [vmem:[#allocation1] ss:$9 sm:$0xff] %v1838_v6 }
 0x5cc   : > { %1848 = vst [vmem:[#allocation1 + $0x1] ss:$9 sm:$0xff] %v1839_v7  ;;  %2112 = vmatmul.msk.f32.vlgmr.msra.gmra.mxu0 %vm401_vm11, %v337_v21  ;;  %2114 = vmatmul.msk.f32.vlgmr.msra.gmra.mxu1 %vm401_vm11, %v337_v21 }
 0x5cd   : > { %1850 = vst [vmem:[#allocation1 + $0x2] ss:$9 sm:$0xff] %v1840_v27 }
 0x5ce   : > { %1852 = vst [vmem:[#allocation1 + $0x3] ss:$9 sm:$0xff] %v1841_v29 }
 0x5d5   : > { %v1853_v31 = vld [vmem:[#allocation1] sm:$0xff]  ;;  %v1854_v32 = vld [vmem:[#allocation1 + $0x9] sm:$0xff] }
 0x5d6   : > { %2115 = vmatpush.msk.msra.mxu2 %vm405_vm6, %v1853_v31  ;;  %2117 = vmatpush.msk.msra.mxu3 %vm405_vm6, %v1854_v32  ;;  %1910 = vst [vmem:[#allocation1] ss:$2 sm:$0xff] %v2351_v0 }
 0x5d7   : > { %2116 = vmatmul.msk.f32.vlgmr.msra.gmra.mxu2 %vm401_vm11, %v338_v30  ;;  %2118 = vmatmul.msk.f32.vlgmr.msra.gmra.mxu3 %vm401_vm11, %v338_v30 }
 0x5dd   : > { %v1911_v33 = vld.sshfl [vmem:[#allocation1] sm:$0xff pattern:$0x75316420]  ;;  %v1912_v34 = vld.sshfl [vmem:[#allocation1 + $0x8] sm:$0xff pattern:$0x75316420] }
 0x5de   : > { %2119 = vmatpush.msk.msrb.mxu0 %vm405_vm6, %v1911_v33  ;;  %2121 = vmatpush.msk.msrb.mxu1 %vm405_vm6, %v1912_v34 }
 0x5df   : > { %2120 = vmatmul.msk.f32.vlgmr.msrb.gmra.mxu0 %vm401_vm11, %v339_v50  ;;  %2122 = vmatmul.msk.f32.vlgmr.msrb.gmra.mxu1 %vm401_vm11, %v339_v50 }
 0x5f4   : > { %v1189_v39 = vpop.permute.xlu0 %1188 }
 0x60d   : > { %v1228_v36 = vpop.f32.mrf.mxu2  ;;  %v1248_v0 = vpop.f32.mrf.mxu3 }
 0x60e   : > { %v1229_v44 = vadd.f32 %v1228_v36, %v1189_v39  ;;  %v1249_v45 = vadd.f32 %v1248_v0, %v1189_v39 }
 0x612   : > { %v1312_v37 = vpop.f32.mrf.mxu0  ;;  %v1332_v38 = vpop.f32.mrf.mxu1 }
 0x613   : > { %v1335_v1 = vadd.f32 %v1312_v37, %v1229_v44  ;;  %v1336_v46 = vadd.f32 %v1332_v38, %v1249_v45 }
 0x623   : > { %v1398_v40 = vpop.f32.mrf.mxu2  ;;  %v1418_v41 = vpop.f32.mrf.mxu3 }
 0x624   : > { %v1421_v47 = vadd.f32 %v1398_v40, %v1335_v1  ;;  %v1422_v48 = vadd.f32 %v1418_v41, %v1336_v46 }
 0x628   : > { %v1484_v42 = vpop.f32.mrf.mxu0  ;;  %v1504_v43 = vpop.f32.mrf.mxu1 }
 0x629   : > { %v1507_v55 = vadd.f32 %v1484_v42, %v1421_v47  ;;  %v1508_v56 = vadd.f32 %v1504_v43, %v1422_v48 }
 0x62b   : > { %v1535_v28 = vpop.f32.mrf.mxu2  ;;  %v1555_v35 = vpop.f32.mrf.mxu3 }
 0x62c   : > { %v1558_v57 = vadd.f32 %v1535_v28, %v1507_v55  ;;  %v1559_v59 = vadd.f32 %v1555_v35, %v1508_v56 }
 0x633   : > { %v1621_v51 = vpop.f32.mrf.mxu0  ;;  %v1641_v52 = vpop.f32.mrf.mxu1 }
 0x634   : > { %v1644_v2 = vadd.f32 %v1621_v51, %v1558_v57  ;;  %v1645_v3 = vadd.f32 %v1641_v52, %v1559_v59 }
 0x644   : > { %v1707_v60 = vpop.f32.mrf.mxu2  ;;  %v1727_v61 = vpop.f32.mrf.mxu3 }
 0x645   : > { %v1730_v4 = vadd.f32 %v1707_v60, %v1644_v2  ;;  %v1731_v5 = vadd.f32 %v1727_v61, %v1645_v3 }
 0x649   : > { %v1793_v62 = vpop.f32.mrf.mxu0  ;;  %v1813_v63 = vpop.f32.mrf.mxu1 }
 0x64a   : > { %v1816_v49 = vadd.f32 %v1793_v62, %v1730_v4  ;;  %v1817_v11 = vadd.f32 %v1813_v63, %v1731_v5 }
 0x65a   : > { %v1879_v8 = vpop.f32.mrf.mxu2  ;;  %v1899_v9 = vpop.f32.mrf.mxu3 }
 0x65b   : > { %v1902_v14 = vadd.f32 %v1879_v8, %v1816_v49  ;;  %v1903_v15 = vadd.f32 %v1899_v9, %v1817_v11 }
 0x65c   : > { %v1937_v12 = vpop.f32.mrf.mxu0  ;;  %v1957_v13 = vpop.f32.mrf.mxu1 }
 0x65d   : > { %v1938_v16 = vadd.f32 %v1937_v12, %v1907_v58  ;;  %v1958_v17 = vadd.f32 %v1957_v13, %v1907_v58 }
 0x65f   : > { %v1960_v18 = vadd.f32 %v1938_v16, %v1902_v14  ;;  %v1961_v19 = vadd.f32 %v1958_v17, %v1903_v15 }
 0x661   : > { %1962 = vst [vmem:[%s298_s19] sm:$0xff] %v1960_v18 }
 0x662   : > { %1963 = vst [vmem:[%s298_s19 + $0x8] sm:$0xff] %v1961_v19 }
 0x663   : > { %2207 = shalt.err (!%p2204_p3)
}
 0x664   : > { %2130 = dma.vmem_to_hbm [thread:$0]  (%p2336_p5), %s1979_s23, 256, %s1981_s17, %s1965_s9  }
 0x665 PF: > { %p2136_p4 = scmp.ge.s32.totalorder %s2242_s30, 2  ;;  %s1992_s13 = sand.u32 1, %s2230_s27  }
 0x666   : > { %s1993_s18 = scalar_lea.sflag [#allocation3], %s1992_s13 }
 0x667   : > { %p2133_p7 = pnand %p2136_p4, %p2340_p6 }
 0x669   : > { %p2134_p8 = pneg %p2133_p7 }
 0x66b   : > { %2225 = dma.done.wait (%p2134_p8), %s1993_s18, 256  }
 0x66c   : > { %2227 = vsyncadd (%p2134_p8), %s1993_s18, 4294967040  ;;  %p18_p9 = scmp.ge.s32.totalorder %s2323_s11, 4   ;;  %s2948_s27 = smov %s2234_s28 }
 0x66d   : > { %s2949_s28 = smov %s2238_s29  ;;  %s2950_s29 = smov %s2334_s14 }
 0x66e   : > { %s2951_s30 = smov %s2323_s11  ;;  %20 = sbr.rel (!%p18_p9) target bundleno = 3 (0x3), region = 135 }
 0x673   :  { %1999 = vsyncpa [#allocation3], 1 }
 0x674   :  { %2001 = vsyncpa [#allocation3 + $0x1], 1 }

</bundles_post_ra>
